<compile_context>
chip_gen: v6e
topology: v6e:2x2x1
jax: 0.10.0
libtpu: 0.0.40
codegen_flags: <defaults>
</compile_context>

<pallas_src>
import functools

import jax
import jax.numpy as jnp
from jax import lax
from jax.experimental import pallas as pl
from jax.experimental.pallas import tpu as pltpu

# Hyperparameters implied by the module (module-level constants in the original
# code base; chosen here).
NUM_MODELS = 16
LATENT_DIM = 32
LATENT_MU = 0.0       # torch.nn.init.uniform_(w, a=LATENT_MU, b=LATENT_SIGMA)
LATENT_SIGMA = 1.0

LANE_WIDTH = 128
BLOCK_B = 1024          # logical embedding lookups produced per grid step
MIN_PALLAS_BATCH = 256  # below this, plain jnp.take beats a kernel launch


def _embedding_kernel(idx_ref, table_ref, out_ref):
    """One-hot MXU gather producing a lane-dense output tile.

    idx_ref   : VMEM int32 (block_rows, pack)                  -- column ids into
                                                                  the expanded table
    table_ref : VMEM f32   (pack*num_models, pack*latent_dim)  -- resident,
                                                                  block-diagonal
    out_ref   : VMEM f32   (block_rows, pack*latent_dim)       -- 128-lane-dense tile
    """
    block_rows, pack = idx_ref.shape
    n_cols = table_ref.shape[0]

    idxs = idx_ref[...]                                        # load once, hoisted
    cols = lax.broadcasted_iota(jnp.int32, (block_rows, n_cols), 1)

    one_hot = jnp.zeros((block_rows, n_cols), jnp.float32)
    for k in range(pack):                                      # static, pack <= 4
        one_hot = one_hot + (idxs[:, k:k + 1] == cols).astype(jnp.float32)

    out_ref[...] = jnp.dot(
        one_hot, table_ref[...],
        precision=jax.lax.Precision.HIGHEST,   # exact f32 pick of table rows
        preferred_element_type=jnp.float32,
    ).astype(out_ref.dtype)


def _expand_table(table, pack):
    """Block-diagonal expansion: block k holds the table shifted into lane
    chunk [k*latent_dim, (k+1)*latent_dim) so 4 logical rows pack per 128 lanes."""
    if pack == 1:
        return table
    return jax.scipy.linalg.block_diag(*([table] * pack))


@functools.partial(jax.jit, static_argnames=("block_b", "min_pallas_batch"))
def latent_embedding(indices, table, *, block_b=BLOCK_B,
                     min_pallas_batch=MIN_PALLAS_BATCH):
    """Pallas equivalent of nn.Embedding(num_models, LATENT_DIM)(indices)."""
    orig_shape = indices.shape
    num_models, latent_dim = table.shape

    flat = indices.reshape(-1).astype(jnp.int32)
    # nn.Embedding raises on OOB indices; VMEM gathers have no runtime check, so clamp.
    flat = jnp.clip(flat, 0, num_models - 1)
    b = flat.shape[0]

    if b < min_pallas_batch:
        # Tiny batch: pad/slice + launch overhead dwarfs the 1 KiB of work.
        return jnp.take(table, flat, axis=0).reshape(orig_shape + (latent_dim,))

    # Pack `pack` logical rows per 128-lane output row (lane-dense stores).
    pack = LANE_WIDTH // latent_dim if LANE_WIDTH % latent_dim == 0 else 1
    block_rows = block_b // pack
    assert block_rows % 8 == 0, "block_b must keep the sublane dim a multiple of 8"

    b_pad = ((b + block_b - 1) // block_b) * block_b
    flat_padded = jnp.pad(flat, (0, b_pad - b))

    # Column id into the block-diagonal table: idx + k*num_models selects the copy
    # of the table living in lane chunk k.
    shifted = (flat_padded.reshape(-1, pack)
               + (jnp.arange(pack, dtype=jnp.int32) * num_models)[None, :])

    big_table = _expand_table(table, pack)       # (pack*num_models, pack*latent_dim)
    total_rows = b_pad // pack
    out_lanes = pack * latent_dim

    out_wide = pl.pallas_call(
        _embedding_kernel,
        out_shape=jax.ShapeDtypeStruct((total_rows, out_lanes), table.dtype),
        grid_spec=pltpu.PrefetchScalarGridSpec(
            num_scalar_prefetch=0,
            grid=(total_rows // block_rows,),
            in_specs=[
                # Per-step (block_rows, pack) int32 index tile: 16 B per 512 B of output.
                pl.BlockSpec((block_rows, pack), lambda i: (i, 0)),
                # Full expanded table resident in VMEM; constant index -> no re-DMA.
                pl.BlockSpec((pack * num_models, out_lanes), lambda i: (0, 0)),
            ],
            out_specs=pl.BlockSpec((block_rows, out_lanes), lambda i: (i, 0)),
        ),
        compiler_params=pltpu.CompilerParams(
            dimension_semantics=("parallel",),   # independent tiles; uses both v7x TCs
        ),
    )(shifted, big_table)

    out = out_wide.reshape(b_pad, latent_dim)[:b]
    return out.reshape(orig_shape + (latent_dim,))


def init_embedding_table(key):
    # Deterministic analogue of torch.nn.init.uniform_(w, LATENT_MU, LATENT_SIGMA)
    return jax.random.uniform(
        key, (NUM_MODELS, LATENT_DIM), dtype=jnp.float32,
        minval=LATENT_MU, maxval=LATENT_SIGMA,
    )


if __name__ == "__main__":
    key = jax.random.PRNGKey(0)
    k_table, k_big, k_small = jax.random.split(key, 3)

    table = init_embedding_table(k_table)

    # 1) Batch large enough to exercise the Pallas path (incl. padding, grid > 1).
    x_big = jax.random.randint(k_big, (2500,), minval=0, maxval=NUM_MODELS,
                               dtype=jnp.int32)
    out_big = jax.block_until_ready(latent_embedding(x_big, table))
    ref_big = jnp.take(table, x_big, axis=0)
    assert out_big.shape == (2500, LATENT_DIM), out_big.shape
    assert jnp.allclose(out_big, ref_big, atol=1e-6, rtol=1e-6), \
        "mismatch vs reference embedding lookup (pallas path)"

    # 2) Multi-dim index shape -> trailing LATENT_DIM axis, like nn.Embedding.
    x_2d = x_big[:2000].reshape(2, 1000)
    out_2d = jax.block_until_ready(latent_embedding(x_2d, table))
    assert out_2d.shape == (2, 1000, LATENT_DIM), out_2d.shape
    assert jnp.allclose(out_2d, jnp.take(table, x_2d, axis=0), atol=1e-6, rtol=1e-6)

    # 3) Tiny batch short-circuits to jnp.take (kernel launch not worth it).
    x_small = jax.random.randint(k_small, (8,), minval=0, maxval=NUM_MODELS,
                                 dtype=jnp.int32)
    out_small = jax.block_until_ready(latent_embedding(x_small, table))
    assert out_small.shape == (8, LATENT_DIM)
    assert jnp.allclose(out_small, jnp.take(table, x_small, axis=0))

    print("KERNEL_OK")
</pallas_src>

<mosaic_0001>
module attributes {stable_mosaic.version = 11 : i64} {
  func.func @_embedding_kernel(%arg0: i32, %arg1: memref<256x4xi32, #tpu.memory_space<vmem>>, %arg2: memref<64x128xf32, #tpu.memory_space<vmem>>, %arg3: memref<256x128xf32, #tpu.memory_space<vmem>>) attributes {dimension_semantics = [#tpu.dimension_semantics<parallel>], iteration_bounds = array<i64: 3>, scalar_prefetch = 0 : i64, scratch_operands = 0 : i64, tpu.core_type = #tpu.core_type<tc>, window_params = [{transform_indices = @transform_0, window_bounds = array<i64: 256, 4>}, {pipeline_mode = #tpu.pipeline_mode<synchronous>, transform_indices = @transform_1, window_bounds = array<i64: 64, 128>}, {transform_indices = @transform_2, window_bounds = array<i64: 256, 128>}]} {
    %c0 = arith.constant 0 : index
    %c0_0 = arith.constant 0 : index
    %0 = vector.load %arg1[%c0, %c0_0] : memref<256x4xi32, #tpu.memory_space<vmem>>, vector<256x4xi32>
    %1 = tpu.iota {dimensions = array<i32: 1>} : vector<256x64xi32>
    %cst = arith.constant 0.000000e+00 : f32
    %2 = vector.broadcast %cst : f32 to vector<256x64xf32>
    %3 = vector.extract_strided_slice %0 {offsets = [0, 0], sizes = [256, 1], strides = [1, 1]} : vector<256x4xi32> to vector<256x1xi32>
    %4 = vector.broadcast %3 : vector<256x1xi32> to vector<256x64xi32>
    %5 = arith.cmpi eq, %4, %1 : vector<256x64xi32>
    %6 = arith.extui %5 : vector<256x64xi1> to vector<256x64xi32>
    %7 = arith.sitofp %6 : vector<256x64xi32> to vector<256x64xf32>
    %8 = arith.addf %2, %7 : vector<256x64xf32>
    %9 = vector.extract_strided_slice %0 {offsets = [0, 1], sizes = [256, 1], strides = [1, 1]} : vector<256x4xi32> to vector<256x1xi32>
    %10 = vector.broadcast %9 : vector<256x1xi32> to vector<256x64xi32>
    %11 = arith.cmpi eq, %10, %1 : vector<256x64xi32>
    %12 = arith.extui %11 : vector<256x64xi1> to vector<256x64xi32>
    %13 = arith.sitofp %12 : vector<256x64xi32> to vector<256x64xf32>
    %14 = arith.addf %8, %13 : vector<256x64xf32>
    %15 = vector.extract_strided_slice %0 {offsets = [0, 2], sizes = [256, 1], strides = [1, 1]} : vector<256x4xi32> to vector<256x1xi32>
    %16 = vector.broadcast %15 : vector<256x1xi32> to vector<256x64xi32>
    %17 = arith.cmpi eq, %16, %1 : vector<256x64xi32>
    %18 = arith.extui %17 : vector<256x64xi1> to vector<256x64xi32>
    %19 = arith.sitofp %18 : vector<256x64xi32> to vector<256x64xf32>
    %20 = arith.addf %14, %19 : vector<256x64xf32>
    %21 = vector.extract_strided_slice %0 {offsets = [0, 3], sizes = [256, 1], strides = [1, 1]} : vector<256x4xi32> to vector<256x1xi32>
    %22 = vector.broadcast %21 : vector<256x1xi32> to vector<256x64xi32>
    %23 = arith.cmpi eq, %22, %1 : vector<256x64xi32>
    %24 = arith.extui %23 : vector<256x64xi1> to vector<256x64xi32>
    %25 = arith.sitofp %24 : vector<256x64xi32> to vector<256x64xf32>
    %26 = arith.addf %20, %25 : vector<256x64xf32>
    %c0_1 = arith.constant 0 : index
    %c0_2 = arith.constant 0 : index
    %27 = vector.load %arg2[%c0_1, %c0_2] : memref<64x128xf32, #tpu.memory_space<vmem>>, vector<64x128xf32>
    %cst_3 = arith.constant dense<0.000000e+00> : vector<256x128xf32>
    %28 = tpu.matmul %26, %27, %cst_3 {dimension_numbers = #tpu.dot_dimension_numbers<[1], [0], [0], [1], [0, 0, 1, 1], [], []>, precision = #tpu.contract_precision<fp32>} : vector<256x64xf32>, vector<64x128xf32>, vector<256x128xf32> -> vector<256x128xf32>
    %c0_4 = arith.constant 0 : index
    %c0_5 = arith.constant 0 : index
    %29 = vector.load %arg3[%c0_4, %c0_5] : memref<256x128xf32, #tpu.memory_space<vmem>>, vector<256x128xf32>
    tpu.vector_store %arg3[%c0_4, %c0_5], %28 {strides = array<i32>} : memref<256x128xf32, #tpu.memory_space<vmem>>, vector<256x128xf32>,
    return
  }
  func.func @transform_0(%arg0: i32) -> (i32, i32) {
    %c0_i32 = arith.constant 0 : i32
    %c0_i32_0 = arith.constant 0 : i32
    return %arg0, %c0_i32 : i32, i32
  }
  func.func @transform_1(%arg0: i32) -> (i32, i32) {
    %c0_i32 = arith.constant 0 : i32
    %c0_i32_0 = arith.constant 0 : i32
    %c0_i32_1 = arith.constant 0 : i32
    return %c0_i32, %c0_i32_0 : i32, i32
  }
  func.func @transform_2(%arg0: i32) -> (i32, i32) {
    %c0_i32 = arith.constant 0 : i32
    %c0_i32_0 = arith.constant 0 : i32
    return %arg0, %c0_i32 : i32, i32
  }
}

</mosaic_0001>

<bundles_post_ra>
// kernel: latent_embedding.1
= control target key start
LH: loop header
LB: loop body
LE: loop exit
PB: predicated region body
PF: predicated region fallthrough
CT: control target
= control target key end

     0   :  { %s4022_s9 = smov 0   ;;  %s5750_s0 = inlined_call_operand.vmem [shape: s32[768,4], index: 0, kind: input, shape index: {}]   ;;  %s5751_s1 = inlined_call_operand.vmem [shape: f32[64,128], index: 1, kind: input, shape index: {}]   ;;  %s5752_s2 = inlined_call_operand.vmem [shape: f32[768,128], index: 2, kind: output, shape index: {}]  }
   0x1 LB: > { %s3140_s10 = sadd.s32 4294967295, %s4000_s9   ;;  %p3144_p0 = scmp.ge.s32.totalorder %s4000_s9, 1  ;;  %s4000_s9 = sphi %s4022_s9, %s12_s9  }
   0x2   : > { %p113_p1 = scmp.lt.s32.totalorder %s4000_s9, 4 }
   0x4   : > { %p114_p2 = pnand %p3144_p0, %p113_p1 }
   0x6   : > { %117 = sbr.rel (%p114_p2) target bundleno = 865 (0x361), region = 28 }
   0xb   : > { %s3145_s11 = sshll.u32 %s3140_s10, 5  ;;  %v5755_v0 = vmov 0   ;;  %v1084_v11 = vld [vmem:[%s5751_s1 + $0x38] sm:$0xff]  ;;  %v1083_v14 = vld [vmem:[%s5751_s1 + $0x30] sm:$0xff]  ;;  %v1082_v17 = vld [vmem:[%s5751_s1 + $0x28] sm:$0xff]  ;;  %v5759_v18 = vmov 1  }
   0xc   : > { %3917 = vset.pattern.permute.xlu1 %v5755_v0  ;;  %3916 = vset.pattern.permute.xlu0 %v5755_v0  ;;  %p136_p3 = scmp.lt.s32.totalorder %s3145_s11, 95  ;;  %v4085_v12 = vand.u32 4294901760, %v1084_v11  ;;  %v4096_v16 = vand.u32 4294901760, %v1083_v14  ;;  %v4111_v21 = vand.u32 4294901760, %v1082_v17  ;;  %v1081_v22 = vld [vmem:[%s5751_s1 + $0x20] sm:$0xff]  ;;  %v1080_v27 = vld [vmem:[%s5751_s1 + $0x18] sm:$0xff] }
   0xd   : > { %v4126_v26 = vand.u32 4294901760, %v1081_v22  ;;  %v5761_v32 = vmov 2   ;;  %v4145_v33 = vand.u32 4294901760, %v1080_v27  ;;  %v1079_v34 = vld [vmem:[%s5751_s1 + $0x10] sm:$0xff]  ;;  %v1078_v40 = vld [vmem:[%s5751_s1 + $0x8] sm:$0xff]  ;;  %v1077_v46 = vld [vmem:[%s5751_s1] sm:$0xff] }
   0xe   : > { %s6057_s11 = smov (!%p136_p3, %s3145_s11), 95  ;;  %v4094_v15 = vsub.f32 %v1084_v11, %v4085_v12  ;;  %3519 = vmatprep.subr.mxu0 %v4085_v12  ;;  %v4109_v20 = vsub.f32 %v1083_v14, %v4096_v16  ;;  %v4124_v25 = vsub.f32 %v1082_v17, %v4111_v21  ;;  %v4156_v38 = vand.u32 4294901760, %v1079_v34 }
   0xf   : > { %s3146_s12 = sshll.u32 %s6057_s11, 3  ;;  %3520 = vmatpush3.msra.mxu0 %v4085_v12  ;;  %v4140_v31 = vsub.f32 %v1081_v22, %v4126_v26  ;;  %v4159_v39 = vsub.f32 %v1080_v27, %v4145_v33  ;;  %v4170_v44 = vand.u32 4294901760, %v1078_v40  ;;  %v4187_v50 = vand.u32 4294901760, %v1077_v46 }
  0x10   : > { %s4040_s15 = scalar_lea.vmem %s5750_s0, %s3146_s12  ;;  %v4106_v19 = vand.u32 4294901760, %v4094_v15  ;;  %3521 = vmatprep.subr.mxu0 %v4096_v16  ;;  %v4121_v24 = vand.u32 4294901760, %v4109_v20  ;;  %v4137_v30 = vand.u32 4294901760, %v4124_v25  ;;  %5856 = vst [vmem:[#allocation3_spill] sm:$0xff] %v4156_v38  ;;  %v4168_v43 = vsub.f32 %v1079_v34, %v4156_v38  ;;  %s5627_s6 = scalar_lea.vmem %s5752_s2, %s3146_s12 }
  0x11   : > { %v4043_v1 = vld [vmem:[%s4040_s15 + $0x10] sm:$0xff]  ;;  %v4046_v2 = vld [vmem:[%s4040_s15] sm:$0xff]  ;;  %v4051_v3 = vld [vmem:[%s4040_s15 + $0x18] sm:$0xff]  ;;  %3522 = vmatpush3.msra.mxu0 %v4096_v16  ;;  %v4154_v37 = vand.u32 4294901760, %v4140_v31  ;;  %5857 = vst [vmem:[#allocation4_spill] sm:$0xff] %v4170_v44  ;;  %v4175_v45 = vand.u32 4294901760, %v4159_v39  ;;  %v4185_v49 = vsub.f32 %v1078_v40, %v4170_v44  ;;  %v4198_v54 = vsub.f32 %v1077_v46, %v4187_v50 }
  0x12   : > { %188 = vperm.xlu1 %3917, %v4043_v1   ;;  %182 = vperm.xlu0 %3916, %v4046_v2   ;;  %v4054_v4 = vld [vmem:[%s4040_s15 + $0x8] sm:$0xff]  ;;  %v4062_v6 = vld [vmem:[%s4040_s15 + $0x20] sm:$0xff]  ;;  %v4067_v7 = vld [vmem:[%s4040_s15 + $0x38] sm:$0xff]  ;;  %v1595_v23 = vsub.f32 %v4094_v15, %v4106_v19  ;;  %v1602_v29 = vsub.f32 %v4109_v20, %v4121_v24  ;;  %v1609_v36 = vsub.f32 %v4124_v25, %v4137_v30  ;;  %v4182_v48 = vand.u32 4294901760, %v4168_v43 }
  0x13   : > { %v4059_v5 = vld [vmem:[%s4040_s15 + $0x28] sm:$0xff]  ;;  %v4070_v8 = vld [vmem:[%s4040_s15 + $0x30] sm:$0xff]  ;;  %v4078_v10 = vld [vmem:[%s4040_s15 + $0x40] sm:$0xff]  ;;  %3523 = vmatprep.subr.mxu0 %v4111_v21  ;;  %5855 = vst [vmem:[#allocation2_spill] sm:$0xff] %v4154_v37  ;;  %v1616_v42 = vsub.f32 %v4140_v31, %v4154_v37  ;;  %v1623_v51 = vsub.f32 %v4159_v39, %v4175_v45  ;;  %v4195_v53 = vand.u32 4294901760, %v4185_v49  ;;  %v5753_v56 = vmov 3  }
  0x14   : > { %v4075_v9 = vld [vmem:[%s4040_s15 + $0x48] sm:$0xff]  ;;  %v4088_v13 = vld [vmem:[%s4040_s15 + $0x50] sm:$0xff]  ;;  %v1596_v28 = vand.u32 4294901760, %v1595_v23  ;;  %3524 = vmatpush3.msra.mxu0 %v4111_v21  ;;  %v1603_v35 = vand.u32 4294901760, %v1602_v29  ;;  %v1610_v41 = vand.u32 4294901760, %v1609_v36  ;;  %5858 = vst [vmem:[#allocation5_spill] sm:$0xff] %v4175_v45  ;;  %v1630_v52 = vsub.f32 %v4168_v43, %v4182_v48 }
  0x15   : > { %3525 = vmatprep.subr.mxu0 %v4126_v26  ;;  %v1617_v47 = vand.u32 4294901760, %v1616_v42  ;;  %5859 = vst [vmem:[#allocation6_spill] sm:$0xff] %v4182_v48  ;;  %5860 = vst [vmem:[#allocation7_spill] sm:$0xff] %v4187_v50  ;;  %v1624_v55 = vand.u32 4294901760, %v1623_v51  ;;  %v1637_v58 = vsub.f32 %v4185_v49, %v4195_v53  ;;  %v4206_v59 = vand.u32 4294901760, %v4198_v54  ;;  %v4246_v63 = vld [vmem:[%s4040_s15 + $0x58] sm:$0xff] }
  0x16   : > { %191 = vperm.xlu1 %3917, %v4051_v3   ;;  %185 = vperm.xlu0 %3916, %v4054_v4   ;;  %5861 = vst [vmem:[#allocation8_spill] sm:$0xff] %v4195_v53  ;;  %v1631_v57 = vand.u32 4294901760, %v1630_v52  ;;  %v4307_v11 = vld [vmem:[%s4040_s15 + $0xb0] sm:$0xff]  ;;  %v4314_v22 = vld [vmem:[%s4040_s15 + $0xb8] sm:$0xff]  ;;  %v4332_v34 = vld [vmem:[%s4040_s15 + $0xc8] sm:$0xff]  ;;  %vm1085_vm7 = vcmask 523264  }
  0x17   : > { %3583 = vmatprep.subr.mxu1 %v1596_v28  ;;  %3526 = vmatpush3.msra.mxu0 %v4126_v26  ;;  %5862 = vst [vmem:[#allocation9_spill] sm:$0xff] %v4206_v59  ;;  %v1638_v60 = vand.u32 4294901760, %v1637_v58  ;;  %v1644_v61 = vsub.f32 %v4198_v54, %v4206_v59  ;;  %v4342_v40 = vld [vmem:[%s4040_s15 + $0xd0] sm:$0xff]  ;;  %v4351_v46 = vld [vmem:[%s4040_s15 + $0xd8] sm:$0xff]  ;;  %v175_v52 = vld [vmem:[%s4040_s15 + $0xe0] sm:$0xff]  ;;  %v5863_v48 = vmov 0  }
  0x18   : > { %3584 = vmatpush3.msra.mxu1 %v1596_v28  ;;  %3527 = vmatprep.subr.mxu0 %v4145_v33  ;;  %v4322_v28 = vld [vmem:[%s4040_s15 + $0xc0] sm:$0xff]  ;;  %v4361_v58 = vld [vmem:[%s4040_s15 + $0xe8] sm:$0xff] }
  0x19   : > { %3585 = vmatprep.subr.mxu1 %v1603_v35  ;;  %3528 = vmatpush3.msra.mxu0 %v4145_v33  ;;  %v1645_v62 = vand.u32 4294901760, %v1644_v61 }
  0x1a   : > { %197 = vperm.xlu1 %3917, %v4059_v5   ;;  %194 = vperm.xlu0 %3916, %v4062_v6  }
  0x1b   : > { %3586 = vmatpush3.msra.mxu1 %v1603_v35  ;;  %3529 = vmatprep.subr.mxu0 %v4156_v38 }
  0x1c   : > { %3587 = vmatprep.subr.mxu1 %v1610_v41  ;;  %3530 = vmatpush3.msra.mxu0 %v4156_v38 }
  0x1d   : > { %3588 = vmatpush3.msra.mxu1 %v1610_v41  ;;  %3531 = vmatprep.subr.mxu0 %v4170_v44 }
  0x1e   : > { %203 = vperm.xlu1 %3917, %v4067_v7   ;;  %200 = vperm.xlu0 %3916, %v4070_v8  }
  0x1f   : > { %3589 = vmatprep.subr.mxu1 %v1617_v47  ;;  %3532 = vmatpush3.msra.mxu0 %v4170_v44 }
  0x20   : > { %3590 = vmatpush3.msra.mxu1 %v1617_v47  ;;  %3533 = vmatprep.subr.mxu0 %v4187_v50 }
  0x21   : > { %3591 = vmatprep.subr.mxu1 %v1624_v55  ;;  %3534 = vmatpush3.msra.mxu0 %v4187_v50 }
  0x22   : > { %209 = vperm.xlu1 %3917, %v4075_v9   ;;  %206 = vperm.xlu0 %3916, %v4078_v10  }
  0x23   : > { %3592 = vmatpush3.msra.mxu1 %v1624_v55  ;;  %3647 = vmatprep.subr.mxu0 %v4094_v15  ;;  %v179_v55 = vlaneseq }
  0x24   : > { %3593 = vmatprep.subr.mxu1 %v1631_v57 }
  0x25   : > { %3594 = vmatpush3.msra.mxu1 %v1631_v57 }
  0x26   : > { %3918 = vset.pattern.permute.xlu1 %v5759_v18  ;;  %212 = vperm.xlu0 %3916, %v4088_v13  }
  0x27   : > { %406 = vperm.xlu1 %3918, %v4046_v2   ;;  %3595 = vmatprep.subr.mxu1 %v1638_v60 }
  0x28   : > { %3596 = vmatpush3.msra.mxu1 %v1638_v60  ;;  %v4363_v60 = vand.u32 127, %v179_v55 }
  0x29   : > { %3597 = vmatprep.subr.mxu1 %v1645_v62 }
  0x2a   : > { %3919 = vset.pattern.permute.xlu0 %v5759_v18  ;;  %3598 = vmatpush3.msra.mxu1 %v1645_v62 }
  0x2b   : > { %3920 = vset.pattern.permute.xlu1 %v5761_v32  ;;  %409 = vperm.xlu0 %3919, %v4054_v4  }
  0x2c   : > { %630 = vperm.xlu1 %3920, %v4046_v2   ;;  %3711 = vmatprep.subr.mxu1 %v4085_v12 }
  0x2f   : > { %412 = vperm.xlu0 %3919, %v4043_v1  }
  0x30   : > { %633 = vperm.xlu1 %3920, %v4054_v4  }
  0x33   : > { %415 = vperm.xlu0 %3919, %v4051_v3  }
  0x34   : > { %3921 = vset.pattern.permute.xlu1 %v5753_v56 }
  0x35   : > { %854 = vperm.xlu1 %3921, %v4046_v2   ;;  %v4257_v2 = vld [vmem:[%s4040_s15 + $0x68] sm:$0xff] }
  0x37   : > { %3922 = vset.pattern.permute.xlu0 %v5761_v32 }
  0x38   : > { %636 = vperm.xlu0 %3922, %v4043_v1  }
  0x39   : > { %857 = vperm.xlu1 %3921, %v4054_v4   ;;  %v4268_v4 = vld [vmem:[%s4040_s15 + $0x78] sm:$0xff] }
  0x3c   : > { %642 = vperm.xlu0 %3922, %v4062_v6  }
  0x3d   : > { %3923 = vset.pattern.permute.xlu1 %v5761_v32 }
  0x3e   : > { %639 = vperm.xlu1 %3923, %v4051_v3  }
  0x40   : > { %648 = vperm.xlu0 %3922, %v4070_v8  }
  0x42   : > { %3924 = vset.pattern.permute.xlu1 %v5759_v18 }
  0x43   : > { %418 = vperm.xlu1 %3924, %v4062_v6  }
  0x44   : > { %654 = vperm.xlu0 %3922, %v4078_v10  }
  0x47   : > { %421 = vperm.xlu1 %3924, %v4059_v5  }
  0x48   : > { %3932 = vset.pattern.permute.xlu0 %v5753_v56 }
  0x49   : > { %860 = vperm.xlu0 %3932, %v4043_v1   ;;  %v4251_v1 = vld [vmem:[%s4040_s15 + $0x60] sm:$0xff] }
  0x4b   : > { %3925 = vset.pattern.permute.xlu1 %v5753_v56 }
  0x4c   : > { %863 = vperm.xlu1 %3925, %v4051_v3   ;;  %v4263_v3 = vld [vmem:[%s4040_s15 + $0x70] sm:$0xff] }
  0x4d   : > { %866 = vperm.xlu0 %3932, %v4062_v6   ;;  %v4279_v6 = vld [vmem:[%s4040_s15 + $0x88] sm:$0xff] }
  0x50   : > { %3926 = vset.pattern.permute.xlu1 %v5761_v32 }
  0x51   : > { %645 = vperm.xlu1 %3926, %v4059_v5   ;;  %872 = vperm.xlu0 %3932, %v4070_v8  }
  0x55   : > { %3927 = vset.pattern.permute.xlu1 %v5759_v18  ;;  %878 = vperm.xlu0 %3932, %v4078_v10  }
  0x56   : > { %424 = vperm.xlu1 %3927, %v4070_v8   ;;  %v4284_v8 = vld [vmem:[%s4040_s15 + $0x90] sm:$0xff] }
  0x59   : > { %881 = vperm.xlu0 %3932, %v4075_v9  }
  0x5a   : > { %427 = vperm.xlu1 %3927, %v4067_v7  }
  0x5d   : > { %884 = vperm.xlu0 %3932, %v4088_v13  }
  0x5e   : > { %3928 = vset.pattern.permute.xlu1 %v5753_v56 }
  0x5f   : > { %869 = vperm.xlu1 %3928, %v4059_v5   ;;  %v4274_v5 = vld [vmem:[%s4040_s15 + $0x80] sm:$0xff] }
  0x61   : > { %887 = vperm.xlu0 %3932, %v4246_v63  }
  0x63   : > { %3929 = vset.pattern.permute.xlu1 %v5761_v32 }
  0x64   : > { %651 = vperm.xlu1 %3929, %v4067_v7  }
  0x65   : > { %890 = vperm.xlu0 %3932, %v4251_v1  }
  0x68   : > { %3930 = vset.pattern.permute.xlu1 %v5759_v18 }
  0x69   : > { %430 = vperm.xlu1 %3930, %v4078_v10   ;;  %893 = vperm.xlu0 %3932, %v4257_v2   ;;  %v4302_v10 = vld [vmem:[%s4040_s15 + $0xa8] sm:$0xff] }
  0x6d   : > { %433 = vperm.xlu1 %3930, %v4075_v9   ;;  %896 = vperm.xlu0 %3932, %v4263_v3  }
  0x71   : > { %3931 = vset.pattern.permute.xlu1 %v5753_v56  ;;  %899 = vperm.xlu0 %3932, %v4268_v4  }
  0x72   : > { %875 = vperm.xlu1 %3931, %v4067_v7   ;;  %v4290_v7 = vld [vmem:[%s4040_s15 + $0x98] sm:$0xff] }
  0x75   : > { %902 = vperm.xlu0 %3932, %v4274_v5  }
  0x76   : > { %3933 = vset.pattern.permute.xlu1 %v5761_v32 }
  0x77   : > { %657 = vperm.xlu1 %3933, %v4075_v9   ;;  %v4296_v9 = vld [vmem:[%s4040_s15 + $0xa0] sm:$0xff] }
  0x79   : > { %905 = vperm.xlu0 %3932, %v4279_v6  }
  0x7b   : > { %3934 = vset.pattern.permute.xlu1 %v5759_v18 }
  0x7c   : > { %436 = vperm.xlu1 %3934, %v4088_v13  }
  0x7d   : > { %908 = vperm.xlu0 %3932, %v4284_v8  }
  0x80   : > { %3935 = vset.pattern.permute.xlu1 %v5755_v0 }
  0x81   : > { %215 = vperm.xlu1 %3935, %v4246_v63   ;;  %911 = vperm.xlu0 %3932, %v4290_v7  }
  0x85   : > { %3936 = vset.pattern.permute.xlu1 %v5759_v18  ;;  %914 = vperm.xlu0 %3932, %v4296_v9  }
  0x86   : > { %439 = vperm.xlu1 %3936, %v4246_v63  }
  0x89   : > { %917 = vperm.xlu0 %3932, %v4302_v10  }
  0x8a   : > { %3937 = vset.pattern.permute.xlu1 %v5761_v32 }
  0x8b   : > { %660 = vperm.xlu1 %3937, %v4088_v13  }
  0x8d   : > { %v4310_v14 = vpop.permute.xlu1 %188  ;;  %920 = vperm.xlu0 %3932, %v4307_v11   ;;  %v183_v17 = vpop.permute.xlu0 %182 }
  0x8e   : > { %vm277_vm0 = vcmp.eq.s32.totalorder %v183_v17, %v4363_v60  ;;  %vm279_vm10 = vcmp.eq.s32.totalorder %v4310_v14, %v4363_v60 }
  0x8f   : > { %3938 = vset.pattern.permute.xlu1 %v5755_v0 }
  0x90   : > { %218 = vperm.xlu1 %3938, %v4251_v1  }
  0x91   : > { %v4318_v23 = vpop.permute.xlu1 %191  ;;  %923 = vperm.xlu0 %3932, %v4314_v22   ;;  %v186_v27 = vpop.permute.xlu0 %185 }
  0x92   : > { %vm278_vm2 = vcmp.eq.s32.totalorder %v186_v27, %v4363_v60  ;;  %vm280_vm15 = vcmp.eq.s32.totalorder %v4318_v23, %v4363_v60 }
  0x94   : > { %3939 = vset.pattern.permute.xlu1 %v5759_v18 }
  0x95   : > { %v4325_v13 = vpop.permute.xlu1 %197  ;;  %442 = vperm.xlu1 %3939, %v4251_v1   ;;  %926 = vperm.xlu0 %3932, %v4322_v28   ;;  %v4329_v29 = vpop.permute.xlu0 %194 }
  0x96   : > { %vm281_vm11 = vcmp.eq.s32.totalorder %v4329_v29, %v4363_v60 }
  0x99   : > { %v4334_v35 = vpop.permute.xlu1 %203  ;;  %3940 = vset.pattern.permute.xlu1 %v5755_v0  ;;  %929 = vperm.xlu0 %3932, %v4332_v34   ;;  %v4338_v36 = vpop.permute.xlu0 %200 }
  0x9a   : > { %221 = vperm.xlu1 %3940, %v4257_v2  }
  0x9d   : > { %v4344_v41 = vpop.permute.xlu1 %209  ;;  %932 = vperm.xlu0 %3932, %v4342_v40   ;;  %v4347_v42 = vpop.permute.xlu0 %206 }
  0x9e   : > { %3941 = vset.pattern.permute.xlu1 %v5759_v18 }
  0x9f   : > { %445 = vperm.xlu1 %3941, %v4257_v2  }
  0xa1   : > { %935 = vperm.xlu0 %3932, %v4351_v46   ;;  %v4355_v47 = vpop.permute.xlu0 %212 }
  0xa2   : > { %v407_v51 = vpop.permute.xlu1 %406 }
  0xa3   : > { %3942 = vset.pattern.permute.xlu1 %v5761_v32  ;;  %vm501_vm1 = vcmp.eq.s32.totalorder %v407_v51, %v4363_v60 }
  0xa4   : > { %666 = vperm.xlu1 %3942, %v4251_v1  }
  0xa5   : > { %938 = vperm.xlu0 %3932, %v175_v52   ;;  %v5780_v52 = vmov 0.0  }
  0xa6   : > { %v410_v57 = vpop.permute.xlu0 %409  ;;  %v3149_v55 = vsel %vm277_vm0, 1.0, %v5780_v52  ;;  %v3181_v17 = vsel %vm501_vm1, 1.0, %v5780_v52  ;;  %v3150_v51 = vsel %vm278_vm2, 1.0, %v5780_v52 }
  0xa7   : > { %v631_v61 = vpop.permute.xlu1 %630  ;;  %vm502_vm3 = vcmp.eq.s32.totalorder %v410_v57, %v4363_v60 }
  0xa8   : > { %3943 = vset.pattern.permute.xlu1 %v5755_v0  ;;  %vm725_vm4 = vcmp.eq.s32.totalorder %v631_v61, %v4363_v60  ;;  %v3182_v56 = vsel %vm502_vm3, 1.0, %v5780_v52  ;;  %v597_v61 = vadd.f32 %v3181_v17, %v3149_v55 }
  0xa9   : > { %224 = vperm.xlu1 %3943, %v4263_v3   ;;  %941 = vperm.xlu0 %3932, %v4361_v58   ;;  %v3213_v27 = vsel %vm725_vm4, 1.0, %v5780_v52  ;;  %v598_v59 = vadd.f32 %v3182_v56, %v3150_v51 }
  0xaa   : > { %v4370_v62 = vpop.permute.xlu0 %412 }
  0xab   : > { %v634_v1 = vpop.permute.xlu1 %633  ;;  %vm503_vm9 = vcmp.eq.s32.totalorder %v4370_v62, %v4363_v60 }
  0xac   : > { %vm726_vm5 = vcmp.eq.s32.totalorder %v634_v1, %v4363_v60  ;;  %v3183_v14 = vsel %vm503_vm9, 1.0, %v5780_v52 }
  0xad   : > { %3944 = vset.pattern.permute.xlu1 %v5759_v18  ;;  %3987 = vset.pattern.permute.xlu0 %v5761_v32  ;;  %v821_v18 = vadd.f32 %v3213_v27, %v597_v61  ;;  %v3214_v32 = vsel %vm726_vm5, 1.0, %v5780_v52  ;;  %v5865_v61 = vmov 1   ;;  %vm283_vm5 = vcmp.eq.s32.totalorder %v4338_v36, %v4363_v60 }
  0xae   : > { %448 = vperm.xlu1 %3944, %v4263_v3   ;;  %663 = vperm.xlu0 %3987, %v4246_v63   ;;  %v4384_v57 = vpop.permute.xlu0 %415  ;;  %v822_v1 = vadd.f32 %v3214_v32, %v598_v59 }
  0xaf   : > { %vm504_vm14 = vcmp.eq.s32.totalorder %v4384_v57, %v4363_v60 }
  0xb0   : > { %v855_v0 = vpop.permute.xlu1 %854  ;;  %v3184_v29 = vsel %vm504_vm14, 1.0, %v5780_v52  ;;  %vm285_vm14 = vcmp.eq.s32.totalorder %v4347_v42, %v4363_v60 }
  0xb1   : > { %vm949_vm6 = vcmp.eq.s32.totalorder %v855_v0, %v4363_v60 }
  0xb2   : > { %v3245_v53 = vsel %vm949_vm6, 1.0, %v5780_v52  ;;  %3945 = vset.pattern.permute.xlu1 %v5863_v48  ;;  %669 = vperm.xlu0 %3987, %v4257_v2  }
  0xb3   : > { %v1045_v63 = vadd.f32 %v3245_v53, %v821_v18  ;;  %227 = vperm.xlu1 %3945, %v4268_v4   ;;  %v637_v55 = vpop.permute.xlu0 %636 }
  0xb4   : > { %v858_v17 = vpop.permute.xlu1 %857  ;;  %vm727_vm12 = vcmp.eq.s32.totalorder %v637_v55, %v4363_v60  ;;  %v3151_v55 = vsel %vm279_vm10, 1.0, %v5780_v52 }
  0xb5   : > { %v1087_v56 = vsel %vm1085_vm7, %v1045_v63, 0  ;;  %vm950_vm8 = vcmp.eq.s32.totalorder %v858_v17, %v4363_v60  ;;  %v599_v23 = vadd.f32 %v3183_v14, %v3151_v55 }
  0xb6   : > { %v4395_v0 = vand.u32 4294901760, %v1087_v56  ;;  %v3246_v51 = vsel %vm950_vm8, 1.0, %v5780_v52  ;;  %675 = vperm.xlu0 %3987, %v4268_v4  }
  0xb7   : > { %v1046_v27 = vadd.f32 %v3246_v51, %v822_v1  ;;  %3946 = vset.pattern.permute.xlu1 %v5865_v61  ;;  %v643_v2 = vpop.permute.xlu0 %642 }
  0xb8   : > { %5864 = vst [vmem:[#allocation10_spill] sm:$0xff] %v4395_v0  ;;  %451 = vperm.xlu1 %3946, %v4268_v4   ;;  %3599 = vmatprep.mubr.f32.mxu1 %v4395_v0  ;;  %v4403_v18 = vsub.f32 %v1087_v56, %v4395_v0  ;;  %v5867_v4 = vmov 2   ;;  %vm729_vm1 = vcmp.eq.s32.totalorder %v643_v2, %v4363_v60 }
  0xb9   : > { %v1090_v32 = vsel %vm1085_vm7, %v1046_v27, 0  ;;  %v640_v53 = vpop.permute.xlu1 %639  ;;  %v3217_v2 = vsel %vm729_vm1, 1.0, %v5780_v52 }
  0xba   : > { %v4406_v59 = vand.u32 4294901760, %v1090_v32  ;;  %v5768_v63 = vand.u32 4294901760, %v4403_v18  ;;  %681 = vperm.xlu0 %3987, %v4279_v6   ;;  %vm728_vm0 = vcmp.eq.s32.totalorder %v640_v53, %v4363_v60  ;;  %v3152_v53 = vsel %vm280_vm15, 1.0, %v5780_v52 }
  0xbb   : > { %v4410_v17 = vpop.permute.xlu0 %648  ;;  %v600_v57 = vadd.f32 %v3184_v29, %v3152_v53 }
  0xbc   : > { %5866 = vst [vmem:[#allocation11_spill] sm:$0xff] %v4406_v59  ;;  %v4413_v1 = vsub.f32 %v1090_v32, %v4406_v59  ;;  %3947 = vset.pattern.permute.xlu1 %v5867_v4  ;;  %3600 = vmatmul.mubr.f32.vlgmr.msra.gmra.mxu1 %v4406_v59  ;;  %v1258_v56 = vsub.f32 %v4403_v18, %v5768_v63 }
  0xbd   : > { %672 = vperm.xlu1 %3947, %v4263_v3   ;;  %3712 = vmatpush3.msra.mxu1 %v4085_v12  ;;  %vm731_vm6 = vcmp.eq.s32.totalorder %v4410_v17, %v4363_v60 }
  0xbe   : > { %v419_v51 = vpop.permute.xlu1 %418  ;;  %v5767_v27 = vand.u32 4294901760, %v4413_v1  ;;  %687 = vperm.xlu0 %3987, %v4290_v7   ;;  %3713 = vmatprep.subr.mxu1 %v4096_v16  ;;  %v1259_v3 = vand.u32 4294901760, %v1258_v56  ;;  %v3153_v56 = vsel %vm281_vm11, 1.0, %v5780_v52  ;;  %vm282_vm11 = vcmp.eq.s32.totalorder %v4325_v13, %v4363_v60 }
  0xbf   : > { %vm505_vm13 = vcmp.eq.s32.totalorder %v419_v51, %v4363_v60  ;;  %v4433_v62 = vpop.permute.xlu0 %654  ;;  %3714 = vmatpush3.msra.mxu1 %v4096_v16  ;;  %v3215_v51 = vsel %vm727_vm12, 1.0, %v5780_v52 }
  0xc0   : > { %v1268_v32 = vsub.f32 %v4413_v1, %v5767_v27  ;;  %3715 = vmatprep.subr.mxu1 %v4111_v21  ;;  %3535 = vmatprep.mubr.f32.mxu0 %v1259_v3  ;;  %v3185_v27 = vsel %vm505_vm13, 1.0, %v5780_v52  ;;  %v823_v0 = vadd.f32 %v3215_v51, %v599_v23  ;;  %vm733_vm15 = vcmp.eq.s32.totalorder %v4433_v62, %v4363_v60 }
  0xc1   : > { %3948 = vset.pattern.permute.xlu1 %v5863_v48  ;;  %3716 = vmatpush3.msra.mxu1 %v4111_v21  ;;  %v601_v45 = vadd.f32 %v3185_v27, %v3153_v56 }
  0xc2   : > { %230 = vperm.xlu1 %3948, %v4274_v5   ;;  %v4455_v63 = vpop.permute.xlu1 %421  ;;  %v1269_v59 = vand.u32 4294901760, %v1268_v32  ;;  %693 = vperm.xlu0 %3987, %v4302_v10   ;;  %v3216_v32 = vsel %vm728_vm0, 1.0, %v5780_v52 }
  0xc3   : > { %3717 = vmatprep.subr.mxu1 %v4126_v26  ;;  %v824_v27 = vadd.f32 %v3216_v32, %v600_v57  ;;  %v825_v23 = vadd.f32 %v3217_v2, %v601_v45  ;;  %vm506_vm10 = vcmp.eq.s32.totalorder %v4455_v63, %v4363_v60 }
  0xc4   : > { %3536 = vmatmul.mubr.f32.vlgmr.msra.gmra.mxu0 %v1269_v59  ;;  %v861_v3 = vpop.permute.xlu0 %860  ;;  %3718 = vmatpush3.msra.mxu1 %v4126_v26 }
  0xc5   : > { %vm951_vm2 = vcmp.eq.s32.totalorder %v861_v3, %v4363_v60  ;;  %3648 = vmatpush3.msra.mxu0 %v4094_v15  ;;  %3719 = vmatprep.subr.mxu1 %v4145_v33 }
  0xc6   : > { %v3247_v14 = vsel %vm951_vm2, 1.0, %v5780_v52  ;;  %3949 = vset.pattern.permute.xlu1 %v5865_v61  ;;  %699 = vperm.xlu0 %3987, %v4314_v22  }
  0xc7   : > { %v1047_v59 = vadd.f32 %v3247_v14, %v823_v0  ;;  %454 = vperm.xlu1 %3949, %v4274_v5   ;;  %v864_v55 = vpop.permute.xlu1 %863  ;;  %3649 = vmatprep.subr.mxu0 %v4109_v20 }
  0xc8   : > { %vm952_vm3 = vcmp.eq.s32.totalorder %v864_v55, %v4363_v60  ;;  %v867_v15 = vpop.permute.xlu0 %866  ;;  %3650 = vmatpush3.msra.mxu0 %v4109_v20  ;;  %3720 = vmatpush3.msra.mxu1 %v4145_v33 }
  0xc9   : > { %v1093_v56 = vsel %vm1085_vm7, %v1047_v59, 0  ;;  %v3248_v51 = vsel %vm952_vm3, 1.0, %v5780_v52  ;;  %vm953_vm4 = vcmp.eq.s32.totalorder %v867_v15, %v4363_v60  ;;  %3651 = vmatprep.subr.mxu0 %v4124_v25  ;;  %3721 = vmatprep.subr.mxu1 %v4156_v38  ;;  %v3155_v15 = vsel %vm283_vm5, 1.0, %v5780_v52 }
  0xca   : > { %v4484_v0 = vand.u32 4294901760, %v1093_v56  ;;  %v1048_v29 = vadd.f32 %v3248_v51, %v824_v27  ;;  %v3249_v53 = vsel %vm953_vm4, 1.0, %v5780_v52  ;;  %705 = vperm.xlu0 %3987, %v4332_v34   ;;  %3652 = vmatpush3.msra.mxu0 %v4124_v25  ;;  %vm284_vm3 = vcmp.eq.s32.totalorder %v4334_v35, %v4363_v60 }
  0xcb   : > { %v1049_v20 = vadd.f32 %v3249_v53, %v825_v23  ;;  %3950 = vset.pattern.permute.xlu1 %v5863_v48  ;;  %3653 = vmatprep.subr.mxu0 %v4140_v31  ;;  %v3156_v35 = vsel %vm284_vm3, 1.0, %v5780_v52 }
  0xcc   : > { %5868 = vst [vmem:[#allocation12_spill] sm:$0xff] %v4484_v0  ;;  %v4492_v45 = vsub.f32 %v1093_v56, %v4484_v0  ;;  %v1096_v3 = vsel %vm1085_vm7, %v1048_v29, 0  ;;  %233 = vperm.xlu1 %3950, %v4279_v6   ;;  %v646_v32 = vpop.permute.xlu1 %645  ;;  %3602 = vmatprep.mubr.f32.mxu1 %v4484_v0  ;;  %v873_v57 = vpop.permute.xlu0 %872 }
  0xcd   : > { %v4497_v2 = vand.u32 4294901760, %v1096_v3  ;;  %v1099_v25 = vsel %vm1085_vm7, %v1049_v20, 0  ;;  %3654 = vmatpush3.msra.mxu0 %v4140_v31  ;;  %vm955_vm8 = vcmp.eq.s32.totalorder %v873_v57, %v4363_v60  ;;  %3722 = vmatpush3.msra.mxu1 %v4156_v38  ;;  %vm730_vm12 = vcmp.eq.s32.totalorder %v646_v32, %v4363_v60 }
  0xce   : > { %v4504_v14 = vand.u32 4294901760, %v1099_v25  ;;  %v5779_v59 = vand.u32 4294901760, %v4492_v45  ;;  %711 = vperm.xlu0 %3987, %v4351_v46   ;;  %3655 = vmatprep.subr.mxu0 %v4159_v39  ;;  %v3251_v20 = vsel %vm955_vm8, 1.0, %v5780_v52  ;;  %v3154_v32 = vsel %vm282_vm11, 1.0, %v5780_v52 }
  0xcf   : > { %5869 = vst [vmem:[#allocation13_spill] sm:$0xff] %v4497_v2  ;;  %v4510_v55 = vsub.f32 %v1096_v3, %v4497_v2  ;;  %3603 = vmatmul.mubr.f32.gmra.mxu1 %v4497_v2  ;;  %3656 = vmatpush3.msra.mxu0 %v4159_v39  ;;  %v3218_v57 = vsel %vm730_vm12, 1.0, %v5780_v52  ;;  %vm286_vm8 = vcmp.eq.s32.totalorder %v4344_v41, %v4363_v60 }
  0xd0   : > { %5870 = vst [vmem:[#allocation14_spill] sm:$0xff] %v4504_v14  ;;  %v4517_v31 = vsub.f32 %v1099_v25, %v4504_v14  ;;  %3951 = vset.pattern.permute.xlu1 %v5865_v61  ;;  %3605 = vmatprep.mubr.f32.mxu1 %v4504_v14  ;;  %v4521_v36 = vpop.permute.xlu0 %878  ;;  %v1278_v27 = vsub.f32 %v4492_v45, %v5779_v59 }
  0xd1   : > { %457 = vperm.xlu1 %3951, %v4279_v6   ;;  %v425_v39 = vpop.permute.xlu1 %424  ;;  %v5777_v56 = vand.u32 4294901760, %v4510_v55  ;;  %3657 = vmatprep.subr.mxu0 %v4168_v43  ;;  %v3219_v6 = vsel %vm731_vm6, 1.0, %v5780_v52  ;;  %vm957_vm0 = vcmp.eq.s32.totalorder %v4521_v36, %v4363_v60  ;;  %vm287_vm11 = vcmp.eq.s32.totalorder %v4355_v47, %v4363_v60 }
  0xd2   : > { %vm507_vm9 = vcmp.eq.s32.totalorder %v425_v39, %v4363_v60  ;;  %v1279_v51 = vand.u32 4294901760, %v1278_v27  ;;  %v5776_v23 = vand.u32 4294901760, %v4517_v31  ;;  %717 = vperm.xlu0 %3987, %v4361_v58   ;;  %3658 = vmatpush3.msra.mxu0 %v4168_v43 }
  0xd3   : > { %v3187_v29 = vsel %vm507_vm9, 1.0, %v5780_v52  ;;  %v1288_v53 = vsub.f32 %v4510_v55, %v5777_v56  ;;  %3659 = vmatprep.subr.mxu0 %v4185_v49  ;;  %3723 = vmatprep.subr.mxu1 %v4170_v44 }
  0xd4   : > { %v603_v58 = vadd.f32 %v3187_v29, %v3155_v15  ;;  %3538 = vmatprep.mubr.f32.mxu0 %v1279_v51  ;;  %v4547_v43 = vpop.permute.xlu0 %881  ;;  %v1298_v17 = vsub.f32 %v4517_v31, %v5776_v23  ;;  %3660 = vmatpush3.msra.mxu0 %v4185_v49  ;;  %v3186_v49 = vsel %vm506_vm10, 1.0, %v5780_v52  ;;  %v5873_v23 = vmov 3  }
  0xd5   : > { %3952 = vset.pattern.permute.xlu1 %v5867_v4  ;;  %v4560_v3 = vpop.permute.xlu1 %427  ;;  %v1289_v25 = vand.u32 4294901760, %v1288_v53  ;;  %3724 = vmatpush3.msra.mxu1 %v4170_v44  ;;  %v602_v63 = vadd.f32 %v3186_v49, %v3154_v32  ;;  %vm958_vm9 = vcmp.eq.s32.totalorder %v4547_v43, %v4363_v60 }
  0xd6   : > { %v827_v27 = vadd.f32 %v3219_v6, %v603_v58  ;;  %678 = vperm.xlu1 %3952, %v4274_v5   ;;  %v1299_v13 = vand.u32 4294901760, %v1298_v17  ;;  %3725 = vmatprep.subr.mxu1 %v4187_v50  ;;  %vm508_vm2 = vcmp.eq.s32.totalorder %v4560_v3, %v4363_v60 }
  0xd7   : > { %3539 = vmatmul.mubr.f32.gmra.mxu0 %v1289_v25  ;;  %3661 = vmatprep.subr.mxu0 %v4198_v54  ;;  %v826_v6 = vadd.f32 %v3218_v57, %v602_v63  ;;  %v4609_v57 = vld [vmem:[%s4040_s15 + $0xf8] sm:$0xff]  ;;  %v3188_v3 = vsel %vm508_vm2, 1.0, %v5780_v52 }
  0xd8   : > { %v1051_v15 = vadd.f32 %v3251_v20, %v827_v27  ;;  %3541 = vmatprep.mubr.f32.mxu0 %v1299_v13  ;;  %v4572_v39 = vpop.permute.xlu0 %884  ;;  %3726 = vmatpush3.msra.mxu1 %v4187_v50 }
  0xd9   : > { %3662 = vmatpush3.msra.mxu0 %v4198_v54  ;;  %3839 = vmatprep.subr.mxu1 %v4085_v12 }
  0xda   : > { %3953 = vset.pattern.permute.xlu1 %v5863_v48  ;;  %v870_v5 = vpop.permute.xlu1 %869  ;;  %v1105_v51 = vsel %vm1085_vm7, %v1051_v15, 0  ;;  %3775 = vmatprep.subr.mxu0 %v4106_v19  ;;  %v3157_v15 = vsel %vm285_vm14, 1.0, %v5780_v52 }
  0xdb   : > { %vm954_vm13 = vcmp.eq.s32.totalorder %v870_v5, %v4363_v60  ;;  %236 = vperm.xlu1 %3953, %v4284_v8   ;;  %v4582_v29 = vand.u32 4294901760, %v1105_v51  ;;  %723 = vperm.xlu0 %3987, %v4609_v57  }
  0xdc   : > { %v3250_v53 = vsel %vm954_vm13, 1.0, %v5780_v52  ;;  %v4586_v54 = vpop.permute.xlu0 %887  ;;  %vm959_vm13 = vcmp.eq.s32.totalorder %v4572_v39, %v4363_v60 }
  0xdd   : > { %5871 = vst [vmem:[#allocation15_spill] sm:$0xff] %v4582_v29  ;;  %v1050_v58 = vadd.f32 %v3250_v53, %v826_v6  ;;  %v4589_v17 = vsub.f32 %v1105_v51, %v4582_v29  ;;  %v3221_v51 = vsel %vm733_vm15, 1.0, %v5780_v52 }
  0xdf   : > { %v1102_v20 = vsel %vm1085_vm7, %v1050_v58, 0  ;;  %3954 = vset.pattern.permute.xlu1 %v5865_v61  ;;  %v652_v25 = vpop.permute.xlu1 %651  ;;  %v5775_v13 = vand.u32 4294901760, %v4589_v17  ;;  %v3253_v58 = vsel %vm957_vm0, 1.0, %v5780_v52  ;;  %3990 = vset.pattern.permute.xlu0 %v5873_v23 }
  0xe0   : > { %v4593_v49 = vand.u32 4294901760, %v1102_v20  ;;  %460 = vperm.xlu1 %3954, %v4284_v8   ;;  %v4596_v27 = vpop.permute.xlu0 %890  ;;  %vm732_vm4 = vcmp.eq.s32.totalorder %v652_v25, %v4363_v60 }
  0xe1   : > { %v1318_v62 = vsub.f32 %v4589_v17, %v5775_v13 }
  0xe2   : > { %5872 = vst [vmem:[#allocation16_spill] sm:$0xff] %v4593_v49  ;;  %v4602_v32 = vsub.f32 %v1102_v20, %v4593_v49  ;;  %3606 = vmatmul.mubr.f32.gmra.mxu1 %v4593_v49 }
  0xe3   : > { %3608 = vmatprep.mubr.f32.mxu1 %v4582_v29 }
  0xe4   : > { %3955 = vset.pattern.permute.xlu1 %v5863_v48  ;;  %v431_v63 = vpop.permute.xlu1 %430  ;;  %v4613_v42 = vpop.permute.xlu0 %893  ;;  %v5778_v5 = vand.u32 4294901760, %v4602_v32 }
  0xe5   : > { %vm509_vm1 = vcmp.eq.s32.totalorder %v431_v63, %v4363_v60  ;;  %239 = vperm.xlu1 %3955, %v4290_v7  }
  0xe6   : > { %v3189_v6 = vsel %vm509_vm1, 1.0, %v5780_v52  ;;  %v1308_v53 = vsub.f32 %v4602_v32, %v5778_v5  ;;  %v1319_v5 = vand.u32 4294901760, %v1318_v62  ;;  %vm961_vm1 = vcmp.eq.s32.totalorder %v4596_v27, %v4363_v60 }
  0xe7   : > { %v605_v36 = vadd.f32 %v3189_v6, %v3157_v15  ;;  %v3220_v15 = vsel %vm732_vm4, 1.0, %v5780_v52  ;;  %v604_v6 = vadd.f32 %v3188_v3, %v3156_v35 }
  0xe8   : > { %v434_v20 = vpop.permute.xlu1 %433  ;;  %v4635_v63 = vpop.permute.xlu0 %896  ;;  %v1309_v13 = vand.u32 4294901760, %v1308_v53 }
  0xe9   : > { %v829_v56 = vadd.f32 %v3221_v51, %v605_v36  ;;  %3956 = vset.pattern.permute.xlu1 %v5865_v61  ;;  %vm510_vm5 = vcmp.eq.s32.totalorder %v434_v20, %v4363_v60  ;;  %v828_v36 = vadd.f32 %v3220_v15, %v604_v6  ;;  %v3158_v20 = vsel %vm286_vm8, 1.0, %v5780_v52 }
  0xea   : > { %463 = vperm.xlu1 %3956, %v4290_v7   ;;  %3542 = vmatmul.mubr.f32.gmra.mxu0 %v1309_v13  ;;  %v3190_v13 = vsel %vm510_vm5, 1.0, %v5780_v52  ;;  %vm960_vm5 = vcmp.eq.s32.totalorder %v4586_v54, %v4363_v60 }
  0xeb   : > { %v1053_v25 = vadd.f32 %v3253_v58, %v829_v56  ;;  %3544 = vmatprep.mubr.f32.mxu0 %v1319_v5  ;;  %v606_v35 = vadd.f32 %v3190_v13, %v3158_v20 }
  0xec   : > { %v4643_v59 = vpop.permute.xlu0 %899 }
  0xed   : > { %v876_v53 = vpop.permute.xlu1 %875  ;;  %v1111_v51 = vsel %vm1085_vm7, %v1053_v25, 0 }
  0xee   : > { %vm956_vm6 = vcmp.eq.s32.totalorder %v876_v53, %v4363_v60  ;;  %3957 = vset.pattern.permute.xlu1 %v5867_v4  ;;  %v4649_v7 = vand.u32 4294901760, %v1111_v51 }
  0xef   : > { %v3252_v56 = vsel %vm956_vm6, 1.0, %v5780_v52  ;;  %684 = vperm.xlu1 %3957, %v4284_v8   ;;  %v3254_v8 = vsel %vm958_vm9, 1.0, %v5780_v52 }
  0xf0   : > { %5874 = vst [vmem:[#allocation17_spill] sm:$0xff] %v4649_v7  ;;  %v1052_v5 = vadd.f32 %v3252_v56, %v828_v36  ;;  %v4656_v62 = vpop.permute.xlu0 %902  ;;  %v4659_v58 = vsub.f32 %v1111_v51, %v4649_v7 }
  0xf2   : > { %v1108_v3 = vsel %vm1085_vm7, %v1052_v5, 0  ;;  %v658_v41 = vpop.permute.xlu1 %657  ;;  %v5782_v43 = vand.u32 4294901760, %v4659_v58 }
  0xf3   : > { %v4665_v15 = vand.u32 4294901760, %v1108_v3  ;;  %vm734_vm10 = vcmp.eq.s32.totalorder %v658_v41, %v4363_v60  ;;  %3958 = vset.pattern.permute.xlu1 %v5863_v48 }
  0xf4   : > { %v3222_v25 = vsel %vm734_vm10, 1.0, %v5780_v52  ;;  %242 = vperm.xlu1 %3958, %v4296_v9   ;;  %v4672_v6 = vpop.permute.xlu0 %905  ;;  %v1338_v20 = vsub.f32 %v4659_v58, %v5782_v43  ;;  %vm962_vm10 = vcmp.eq.s32.totalorder %v4613_v42, %v4363_v60 }
  0xf5   : > { %5875 = vst [vmem:[#allocation18_spill] sm:$0xff] %v4665_v15  ;;  %v4676_v53 = vsub.f32 %v1108_v3, %v4665_v15  ;;  %v830_v51 = vadd.f32 %v3222_v25, %v606_v35  ;;  %3609 = vmatmul.mubr.f32.gmra.mxu1 %v4665_v15 }
  0xf6   : > { %3611 = vmatprep.mubr.f32.mxu1 %v4649_v7  ;;  %v1339_v52 = vand.u32 4294901760, %v1338_v20 }
  0xf7   : > { %v1054_v36 = vadd.f32 %v3254_v8, %v830_v51  ;;  %v437_v56 = vpop.permute.xlu1 %436  ;;  %v5783_v13 = vand.u32 4294901760, %v4676_v53 }
  0xf8   : > { %3959 = vset.pattern.permute.xlu1 %v5865_v61  ;;  %v4682_v5 = vpop.permute.xlu0 %908  ;;  %vm511_vm12 = vcmp.eq.s32.totalorder %v437_v56, %v4363_v60 }
  0xf9   : > { %v1114_v3 = vsel %vm1085_vm7, %v1054_v36, 0  ;;  %466 = vperm.xlu1 %3959, %v4296_v9   ;;  %v1328_v41 = vsub.f32 %v4676_v53, %v5783_v13 }
  0xfa   : > { %v4692_v35 = vand.u32 4294901760, %v1114_v3 }
  0xfb   : > { %v1329_v8 = vand.u32 4294901760, %v1328_v41 }
  0xfc   : > { %5876 = vst [vmem:[#allocation19_spill] sm:$0xff] %v4692_v35  ;;  %v4694_v25 = vpop.permute.xlu1 %215  ;;  %3612 = vmatmul.mubr.f32.gmra.mxu1 %v4692_v35  ;;  %v4697_v51 = vpop.permute.xlu0 %911  ;;  %v4700_v43 = vsub.f32 %v1114_v3, %v4692_v35 }
  0xfd   : > { %3960 = vset.pattern.permute.xlu1 %v5863_v48  ;;  %3545 = vmatmul.mubr.f32.gmra.mxu0 %v1329_v8  ;;  %vm288_vm4 = vcmp.eq.s32.totalorder %v4694_v25, %v4363_v60 }
  0xfe   : > { %245 = vperm.xlu1 %3960, %v4302_v10   ;;  %3547 = vmatprep.mubr.f32.mxu0 %v1339_v52  ;;  %v5788_v36 = vand.u32 4294901760, %v4700_v43  ;;  %v5877_v52 = vmov 0.0  }
  0xff   : > { %v3159_v8 = vsel %vm287_vm11, 1.0, %v5877_v52  ;;  %v3191_v35 = vsel %vm511_vm12, 1.0, %v5877_v52  ;;  %v3255_v56 = vsel %vm959_vm13, 1.0, %v5877_v52  ;;  %v3256_v25 = vsel %vm960_vm5, 1.0, %v5877_v52 }
 0x100   : > { %v4705_v13 = vpop.permute.xlu0 %914  ;;  %v1348_v41 = vsub.f32 %v4700_v43, %v5788_v36  ;;  %v607_v36 = vadd.f32 %v3191_v35, %v3159_v8  ;;  %v3258_v38 = vsel %vm962_vm10, 1.0, %v5877_v52 }
 0x101   : > { %v4713_v20 = vpop.permute.xlu1 %439 }
 0x102   : > { %3961 = vset.pattern.permute.xlu1 %v5865_v61  ;;  %v1349_v3 = vand.u32 4294901760, %v1348_v41  ;;  %vm512_vm3 = vcmp.eq.s32.totalorder %v4713_v20, %v4363_v60 }
 0x103   : > { %469 = vperm.xlu1 %3961, %v4302_v10  }
 0x104   : > { %3548 = vmatmul.mubr.f32.gmra.mxu0 %v1349_v3  ;;  %v4719_v7 = vpop.permute.xlu0 %917 }
 0x106   : > { %v661_v47 = vpop.permute.xlu1 %660 }
 0x107   : > { %vm735_vm14 = vcmp.eq.s32.totalorder %v661_v47, %v4363_v60  ;;  %3962 = vset.pattern.permute.xlu1 %v5867_v4 }
 0x108   : > { %v3223_v10 = vsel %vm735_vm14, 1.0, %v5877_v52  ;;  %690 = vperm.xlu1 %3962, %v4296_v9   ;;  %v4728_v41 = vpop.permute.xlu0 %920  ;;  %vm964_vm14 = vcmp.eq.s32.totalorder %v4643_v59, %v4363_v60 }
 0x109   : > { %v831_v3 = vadd.f32 %v3223_v10, %v607_v36 }
 0x10b   : > { %v1055_v15 = vadd.f32 %v3255_v56, %v831_v3  ;;  %v219_v29 = vpop.permute.xlu1 %218 }
 0x10c   : > { %3963 = vset.pattern.permute.xlu1 %v5863_v48  ;;  %v4731_v39 = vpop.permute.xlu0 %923  ;;  %vm289_vm0 = vcmp.eq.s32.totalorder %v219_v29, %v4363_v60  ;;  %v3257_v29 = vsel %vm961_vm1, 1.0, %v5877_v52 }
 0x10d   : > { %v1117_v35 = vsel %vm1085_vm7, %v1055_v15, 0  ;;  %248 = vperm.xlu1 %3963, %v4307_v11  }
 0x10e   : > { %v4735_v8 = vand.u32 4294901760, %v1117_v35 }
 0x110   : > { %5878 = vst [vmem:[#allocation20_spill] sm:$0xff] %v4735_v8  ;;  %v443_v47 = vpop.permute.xlu1 %442  ;;  %3614 = vmatprep.mubr.f32.mxu1 %v4735_v8  ;;  %v4738_v49 = vpop.permute.xlu0 %926  ;;  %v4741_v9 = vsub.f32 %v1117_v35, %v4735_v8 }
 0x111   : > { %3964 = vset.pattern.permute.xlu1 %v5865_v61  ;;  %vm513_vm15 = vcmp.eq.s32.totalorder %v443_v47, %v4363_v60 }
 0x112   : > { %472 = vperm.xlu1 %3964, %v4307_v11   ;;  %v5799_v36 = vand.u32 4294901760, %v4741_v9 }
 0x114   : > { %v4746_v56 = vpop.permute.xlu0 %929  ;;  %v1358_v15 = vsub.f32 %v4741_v9, %v5799_v36  ;;  %v3193_v36 = vsel %vm513_vm15, 1.0, %v5877_v52 }
 0x115   : > { %v222_v10 = vpop.permute.xlu1 %221 }
 0x116   : > { %3965 = vset.pattern.permute.xlu1 %v5863_v48  ;;  %v1359_v3 = vand.u32 4294901760, %v1358_v15  ;;  %v3161_v15 = vsel %vm289_vm0, 1.0, %v5877_v52  ;;  %vm290_vm8 = vcmp.eq.s32.totalorder %v222_v10, %v4363_v60 }
 0x117   : > { %251 = vperm.xlu1 %3965, %v4314_v22   ;;  %v609_v2 = vadd.f32 %v3193_v36, %v3161_v15  ;;  %v3192_v15 = vsel %vm512_vm3, 1.0, %v5877_v52  ;;  %v3162_v10 = vsel %vm290_vm8, 1.0, %v5877_v52  ;;  %vm966_vm8 = vcmp.eq.s32.totalorder %v4672_v6, %v4363_v60 }
 0x118   : > { %3550 = vmatprep.mubr.f32.mxu0 %v1359_v3  ;;  %v4753_v35 = vpop.permute.xlu0 %932  ;;  %v3262_v6 = vsel %vm966_vm8, 1.0, %v5877_v52 }
 0x11a   : > { %v446_v8 = vpop.permute.xlu1 %445 }
 0x11b   : > { %3966 = vset.pattern.permute.xlu1 %v5865_v61  ;;  %vm514_vm6 = vcmp.eq.s32.totalorder %v446_v8, %v4363_v60 }
 0x11c   : > { %475 = vperm.xlu1 %3966, %v4314_v22   ;;  %v4759_v14 = vpop.permute.xlu0 %935 }
 0x11f   : > { %v667_v3 = vpop.permute.xlu1 %666 }
 0x120   : > { %vm737_vm2 = vcmp.eq.s32.totalorder %v667_v3, %v4363_v60  ;;  %3967 = vset.pattern.permute.xlu1 %v5867_v4  ;;  %v4767_v47 = vpop.permute.xlu0 %938 }
 0x121   : > { %v3225_v22 = vsel %vm737_vm2, 1.0, %v5877_v52  ;;  %696 = vperm.xlu1 %3967, %v4307_v11   ;;  %vm963_vm2 = vcmp.eq.s32.totalorder %v4635_v63, %v4363_v60 }
 0x122   : > { %v833_v0 = vadd.f32 %v3225_v22, %v609_v2  ;;  %v3194_v22 = vsel %vm514_vm6, 1.0, %v5877_v52 }
 0x124   : > { %v1057_v27 = vadd.f32 %v3257_v29, %v833_v0  ;;  %v4774_v50 = vpop.permute.xlu1 %224  ;;  %v4776_v36 = vpop.permute.xlu0 %941  ;;  %v3160_v0 = vsel %vm288_vm4, 1.0, %v5877_v52 }
 0x125   : > { %3968 = vset.pattern.permute.xlu1 %v5863_v48  ;;  %v608_v3 = vadd.f32 %v3192_v15, %v3160_v0  ;;  %v610_v15 = vadd.f32 %v3194_v22, %v3162_v10  ;;  %vm291_vm0 = vcmp.eq.s32.totalorder %v4774_v50, %v4363_v60 }
 0x126   : > { %254 = vperm.xlu1 %3968, %v4322_v28   ;;  %v1123_v11 = vsel %vm1085_vm7, %v1057_v27, 0 }
 0x127   : > { %v4789_v29 = vand.u32 4294901760, %v1123_v11 }
 0x129   : > { %v449_v2 = vpop.permute.xlu1 %448  ;;  %v664_v20 = vpop.permute.xlu0 %663  ;;  %5879 = vst [vmem:[#allocation21_spill] sm:$0xff] %v4789_v29  ;;  %v4801_v0 = vsub.f32 %v1123_v11, %v4789_v29 }
 0x12a   : > { %vm736_vm9 = vcmp.eq.s32.totalorder %v664_v20, %v4363_v60  ;;  %3969 = vset.pattern.permute.xlu1 %v5865_v61  ;;  %vm515_vm15 = vcmp.eq.s32.totalorder %v449_v2, %v4363_v60 }
 0x12b   : > { %v3224_v54 = vsel %vm736_vm9, 1.0, %v5877_v52  ;;  %478 = vperm.xlu1 %3969, %v4322_v28   ;;  %v5812_v22 = vand.u32 4294901760, %v4801_v0 }
 0x12c   : > { %v832_v8 = vadd.f32 %v3224_v54, %v608_v3 }
 0x12d   : > { %v670_v27 = vpop.permute.xlu0 %669 }
 0x12e   : > { %v1056_v20 = vadd.f32 %v3256_v25, %v832_v8  ;;  %vm738_vm11 = vcmp.eq.s32.totalorder %v670_v27, %v4363_v60  ;;  %v228_v44 = vpop.permute.xlu1 %227 }
 0x12f   : > { %v3226_v37 = vsel %vm738_vm11, 1.0, %v5877_v52  ;;  %3970 = vset.pattern.permute.xlu1 %v5863_v48  ;;  %vm292_vm12 = vcmp.eq.s32.totalorder %v228_v44, %v4363_v60  ;;  %vm965_vm11 = vcmp.eq.s32.totalorder %v4656_v62, %v4363_v60 }
 0x130   : > { %v1120_v42 = vsel %vm1085_vm7, %v1056_v20, 0  ;;  %v834_v3 = vadd.f32 %v3226_v37, %v610_v15  ;;  %257 = vperm.xlu1 %3970, %v4332_v34   ;;  %v3164_v44 = vsel %vm292_vm12, 1.0, %v5877_v52  ;;  %v3195_v20 = vsel %vm515_vm15, 1.0, %v5877_v52 }
 0x131   : > { %v4809_v54 = vand.u32 4294901760, %v1120_v42  ;;  %v676_v11 = vpop.permute.xlu0 %675 }
 0x132   : > { %v1058_v25 = vadd.f32 %v3258_v38, %v834_v3  ;;  %vm740_vm13 = vcmp.eq.s32.totalorder %v676_v11, %v4363_v60  ;;  %v1378_v3 = vsub.f32 %v4801_v0, %v5812_v22  ;;  %v3259_v22 = vsel %vm963_vm2, 1.0, %v5877_v52 }
 0x133   : > { %v4818_v8 = vsub.f32 %v1120_v42, %v4809_v54  ;;  %v452_v37 = vpop.permute.xlu1 %451  ;;  %3615 = vmatmul.mubr.f32.gmra.mxu1 %v4809_v54  ;;  %v3228_v27 = vsel %vm740_vm13, 1.0, %v5877_v52 }
 0x134   : > { %v1126_v38 = vsel %vm1085_vm7, %v1058_v25, 0  ;;  %vm516_vm1 = vcmp.eq.s32.totalorder %v452_v37, %v4363_v60  ;;  %3971 = vset.pattern.permute.xlu1 %v5865_v61  ;;  %3617 = vmatprep.mubr.f32.mxu1 %v4789_v29  ;;  %v3163_v37 = vsel %vm291_vm0, 1.0, %v5877_v52  ;;  %v1379_v29 = vand.u32 4294901760, %v1378_v3 }
 0x135   : > { %v4828_v2 = vand.u32 4294901760, %v1126_v38  ;;  %v3196_v10 = vsel %vm516_vm1, 1.0, %v5877_v52  ;;  %481 = vperm.xlu1 %3971, %v4332_v34   ;;  %v5815_v15 = vand.u32 4294901760, %v4818_v8  ;;  %v3260_v34 = vsel %vm964_vm14, 1.0, %v5877_v52 }
 0x136   : > { %v612_v42 = vadd.f32 %v3196_v10, %v3164_v44  ;;  %v611_v10 = vadd.f32 %v3195_v20, %v3163_v37  ;;  %vm968_vm0 = vcmp.eq.s32.totalorder %v4697_v51, %v4363_v60 }
 0x137   : > { %5880 = vst [vmem:[#allocation22_spill] sm:$0xff] %v4828_v2  ;;  %v4847_v11 = vsub.f32 %v1126_v38, %v4828_v2  ;;  %3618 = vmatmul.mubr.f32.gmra.mxu1 %v4828_v2  ;;  %v1368_v25 = vsub.f32 %v4818_v8, %v5815_v15  ;;  %v3264_v51 = vsel %vm968_vm0, 1.0, %v5877_v52 }
 0x138   : > { %v836_v63 = vadd.f32 %v3228_v27, %v612_v42  ;;  %v673_v44 = vpop.permute.xlu1 %672 }
 0x139   : > { %vm739_vm3 = vcmp.eq.s32.totalorder %v673_v44, %v4363_v60  ;;  %3972 = vset.pattern.permute.xlu1 %v5867_v4  ;;  %v1369_v59 = vand.u32 4294901760, %v1368_v25  ;;  %v5822_v38 = vand.u32 4294901760, %v4847_v11 }
 0x13a   : > { %v1060_v2 = vadd.f32 %v3260_v34, %v836_v63  ;;  %v3227_v15 = vsel %vm739_vm3, 1.0, %v5877_v52  ;;  %702 = vperm.xlu1 %3972, %v4322_v28   ;;  %vm967_vm3 = vcmp.eq.s32.totalorder %v4682_v5, %v4363_v60 }
 0x13b   : > { %v835_v50 = vadd.f32 %v3227_v15, %v611_v10  ;;  %3551 = vmatmul.mubr.f32.gmra.mxu0 %v1369_v59  ;;  %v1388_v27 = vsub.f32 %v4847_v11, %v5822_v38 }
 0x13c   : > { %v1132_v20 = vsel %vm1085_vm7, %v1060_v2, 0  ;;  %3553 = vmatprep.mubr.f32.mxu0 %v1379_v29 }
 0x13d   : > { %v4867_v42 = vand.u32 4294901760, %v1132_v20  ;;  %v1059_v25 = vadd.f32 %v3259_v22, %v835_v50  ;;  %v231_v37 = vpop.permute.xlu1 %230  ;;  %v1389_v44 = vand.u32 4294901760, %v1388_v27  ;;  %v682_v27 = vpop.permute.xlu0 %681 }
 0x13e   : > { %3973 = vset.pattern.permute.xlu1 %v5863_v48  ;;  %vm742_vm5 = vcmp.eq.s32.totalorder %v682_v27, %v4363_v60  ;;  %vm293_vm10 = vcmp.eq.s32.totalorder %v231_v37, %v4363_v60 }
 0x13f   : > { %v4871_v34 = vsub.f32 %v1132_v20, %v4867_v42  ;;  %v1129_v28 = vsel %vm1085_vm7, %v1059_v25, 0  ;;  %260 = vperm.xlu1 %3973, %v4342_v40   ;;  %3554 = vmatmul.mubr.f32.gmra.mxu0 %v1389_v44 }
 0x140   : > { %v4875_v15 = vand.u32 4294901760, %v1129_v28 }
 0x141   : > { %v5818_v2 = vand.u32 4294901760, %v4871_v34 }
 0x142   : > { %v4879_v29 = vsub.f32 %v1129_v28, %v4875_v15  ;;  %v455_v22 = vpop.permute.xlu1 %454  ;;  %3620 = vmatprep.mubr.f32.mxu1 %v4875_v15  ;;  %v3230_v28 = vsel %vm742_vm5, 1.0, %v5877_v52 }
 0x143   : > { %3974 = vset.pattern.permute.xlu1 %v5865_v61  ;;  %3621 = vmatmul.mubr.f32.gmra.mxu1 %v4867_v42  ;;  %v1408_v63 = vsub.f32 %v4871_v34, %v5818_v2  ;;  %vm517_vm6 = vcmp.eq.s32.totalorder %v455_v22, %v4363_v60 }
 0x144   : > { %484 = vperm.xlu1 %3974, %v4342_v40   ;;  %v5821_v3 = vand.u32 4294901760, %v4879_v29  ;;  %v3197_v22 = vsel %vm517_vm6, 1.0, %v5877_v52 }
 0x145   : > { %v1409_v20 = vand.u32 4294901760, %v1408_v63 }
 0x146   : > { %v1398_v10 = vsub.f32 %v4879_v29, %v5821_v3 }
 0x147   : > { %v234_v59 = vpop.permute.xlu1 %233 }
 0x148   : > { %3975 = vset.pattern.permute.xlu1 %v5863_v48  ;;  %v1399_v50 = vand.u32 4294901760, %v1398_v10  ;;  %vm294_vm4 = vcmp.eq.s32.totalorder %v234_v59, %v4363_v60  ;;  %v3165_v10 = vsel %vm293_vm10, 1.0, %v5877_v52 }
 0x149   : > { %263 = vperm.xlu1 %3975, %v4351_v46   ;;  %v3166_v25 = vsel %vm294_vm4, 1.0, %v5877_v52 }
 0x14a   : > { %3556 = vmatprep.mubr.f32.mxu0 %v1399_v50  ;;  %v613_v50 = vadd.f32 %v3197_v22, %v3165_v10 }
 0x14b   : > { %3557 = vmatmul.mubr.f32.gmra.mxu0 %v1409_v20 }
 0x14c   : > { %v458_v40 = vpop.permute.xlu1 %457 }
 0x14d   : > { %vm518_vm9 = vcmp.eq.s32.totalorder %v458_v40, %v4363_v60  ;;  %3976 = vset.pattern.permute.xlu1 %v5865_v61  ;;  %v3991_v40 = vld [vmem:[%s4040_s15 + $0xd0] sm:$0xff] }
 0x14e   : > { %v3198_v44 = vsel %vm518_vm9, 1.0, %v5877_v52  ;;  %487 = vperm.xlu1 %3976, %v4351_v46   ;;  %v3261_v46 = vsel %vm965_vm11, 1.0, %v5877_v52  ;;  %vm970_vm11 = vcmp.eq.s32.totalorder %v4719_v7, %v4363_v60 }
 0x14f   : > { %v614_v63 = vadd.f32 %v3198_v44, %v3166_v25 }
 0x151   : > { %v838_v37 = vadd.f32 %v3230_v28, %v614_v63  ;;  %v679_v59 = vpop.permute.xlu1 %678 }
 0x152   : > { %vm741_vm12 = vcmp.eq.s32.totalorder %v679_v59, %v4363_v60  ;;  %3977 = vset.pattern.permute.xlu1 %v5867_v4  ;;  %v3992_v59 = vld [vmem:[%s4040_s15 + $0xe0] sm:$0xff] }
 0x153   : > { %v1062_v27 = vadd.f32 %v3262_v6, %v838_v37  ;;  %v3229_v20 = vsel %vm741_vm12, 1.0, %v5877_v52  ;;  %708 = vperm.xlu1 %3977, %v3991_v40   ;;  %vm969_vm12 = vcmp.eq.s32.totalorder %v4705_v13, %v4363_v60 }
 0x154   : > { %v837_v62 = vadd.f32 %v3229_v20, %v613_v50  ;;  %v3265_v13 = vsel %vm969_vm12, 1.0, %v5877_v52  ;;  %vm974_vm12 = vcmp.eq.s32.totalorder %v4746_v56, %v4363_v60 }
 0x155   : > { %v1138_v25 = vsel %vm1085_vm7, %v1062_v27, 0 }
 0x156   : > { %v4917_v44 = vand.u32 4294901760, %v1138_v25  ;;  %v1061_v28 = vadd.f32 %v3261_v46, %v837_v62  ;;  %v237_v63 = vpop.permute.xlu1 %236 }
 0x157   : > { %3978 = vset.pattern.permute.xlu1 %v5863_v48  ;;  %vm295_vm2 = vcmp.eq.s32.totalorder %v237_v63, %v4363_v60 }
 0x158   : > { %v4921_v22 = vsub.f32 %v1138_v25, %v4917_v44  ;;  %v1135_v10 = vsel %vm1085_vm7, %v1061_v28, 0  ;;  %266 = vperm.xlu1 %3978, %v3992_v59   ;;  %v688_v28 = vpop.permute.xlu0 %687 }
 0x159   : > { %v4925_v6 = vand.u32 4294901760, %v1135_v10  ;;  %vm744_vm14 = vcmp.eq.s32.totalorder %v688_v28, %v4363_v60 }
 0x15a   : > { %v5819_v37 = vand.u32 4294901760, %v4921_v22 }
 0x15b   : > { %v4929_v50 = vsub.f32 %v1135_v10, %v4925_v6  ;;  %v461_v27 = vpop.permute.xlu1 %460  ;;  %3623 = vmatprep.mubr.f32.mxu1 %v4925_v6  ;;  %v3993_v10 = vld [vmem:[%s4040_s15 + $0xe8] sm:$0xff] }
 0x15c   : > { %3979 = vset.pattern.permute.xlu1 %v5865_v61  ;;  %3624 = vmatmul.mubr.f32.gmra.mxu1 %v4917_v44  ;;  %v1428_v20 = vsub.f32 %v4921_v22, %v5819_v37  ;;  %vm519_vm15 = vcmp.eq.s32.totalorder %v461_v27, %v4363_v60 }
 0x15d   : > { %490 = vperm.xlu1 %3979, %v3992_v59   ;;  %v5820_v46 = vand.u32 4294901760, %v4929_v50 }
 0x15e   : > { %v1429_v2 = vand.u32 4294901760, %v1428_v20 }
 0x15f   : > { %v1418_v40 = vsub.f32 %v4929_v50, %v5820_v46 }
 0x160   : > { %v240_v62 = vpop.permute.xlu1 %239 }
 0x161   : > { %3980 = vset.pattern.permute.xlu1 %v5863_v48  ;;  %v1419_v25 = vand.u32 4294901760, %v1418_v40  ;;  %vm296_vm13 = vcmp.eq.s32.totalorder %v240_v62, %v4363_v60  ;;  %v3199_v62 = vsel %vm519_vm15, 1.0, %v5877_v52 }
 0x162   : > { %269 = vperm.xlu1 %3980, %v3993_v10   ;;  %v3168_v20 = vsel %vm296_vm13, 1.0, %v5877_v52 }
 0x163   : > { %3559 = vmatprep.mubr.f32.mxu0 %v1419_v25 }
 0x164   : > { %3560 = vmatmul.mubr.f32.gmra.mxu0 %v1429_v2  ;;  %v3232_v2 = vsel %vm744_vm14, 1.0, %v5877_v52 }
 0x165   : > { %v464_v37 = vpop.permute.xlu1 %463 }
 0x166   : > { %vm520_vm1 = vcmp.eq.s32.totalorder %v464_v37, %v4363_v60  ;;  %3981 = vset.pattern.permute.xlu1 %v5865_v61  ;;  %v3167_v37 = vsel %vm295_vm2, 1.0, %v5877_v52 }
 0x167   : > { %v3200_v40 = vsel %vm520_vm1, 1.0, %v5877_v52  ;;  %493 = vperm.xlu1 %3981, %v3993_v10   ;;  %v615_v28 = vadd.f32 %v3199_v62, %v3167_v37  ;;  %v3263_v10 = vsel %vm967_vm3, 1.0, %v5877_v52  ;;  %vm972_vm3 = vcmp.eq.s32.totalorder %v4731_v39, %v4363_v60 }
 0x168   : > { %v616_v27 = vadd.f32 %v3200_v40, %v3168_v20  ;;  %v4965_v40 = vld [vmem:[%s4040_s15 + $0xf0] sm:$0xff] }
 0x16a   : > { %v840_v25 = vadd.f32 %v3232_v2, %v616_v27  ;;  %v685_v63 = vpop.permute.xlu1 %684 }
 0x16b   : > { %vm743_vm4 = vcmp.eq.s32.totalorder %v685_v63, %v4363_v60  ;;  %3982 = vset.pattern.permute.xlu1 %v5867_v4 }
 0x16c   : > { %v1064_v46 = vadd.f32 %v3264_v51, %v840_v25  ;;  %v3231_v3 = vsel %vm743_vm4, 1.0, %v5877_v52  ;;  %714 = vperm.xlu1 %3982, %v3992_v59   ;;  %vm971_vm4 = vcmp.eq.s32.totalorder %v4728_v41, %v4363_v60 }
 0x16d   : > { %v839_v20 = vadd.f32 %v3231_v3, %v615_v28 }
 0x16e   : > { %v1144_v5 = vsel %vm1085_vm7, %v1064_v46, 0 }
 0x16f   : > { %v4967_v38 = vand.u32 4294901760, %v1144_v5  ;;  %v1063_v2 = vadd.f32 %v3263_v10, %v839_v20  ;;  %v243_v27 = vpop.permute.xlu1 %242 }
 0x170   : > { %3983 = vset.pattern.permute.xlu1 %v5863_v48  ;;  %vm297_vm10 = vcmp.eq.s32.totalorder %v243_v27, %v4363_v60  ;;  %v3266_v27 = vsel %vm970_vm11, 1.0, %v5877_v52 }
 0x171   : > { %5881 = vst [vmem:[#allocation23_spill] sm:$0xff] %v4967_v38  ;;  %v4971_v62 = vsub.f32 %v1144_v5, %v4967_v38  ;;  %v1141_v37 = vsel %vm1085_vm7, %v1063_v2, 0  ;;  %272 = vperm.xlu1 %3983, %v4965_v40   ;;  %v694_v5 = vpop.permute.xlu0 %693 }
 0x172   : > { %v4975_v51 = vand.u32 4294901760, %v1141_v37  ;;  %vm746_vm6 = vcmp.eq.s32.totalorder %v694_v5, %v4363_v60  ;;  %v3169_v5 = vsel %vm297_vm10, 1.0, %v5877_v52 }
 0x173   : > { %v5823_v3 = vand.u32 4294901760, %v4971_v62 }
 0x174   : > { %v4979_v59 = vsub.f32 %v1141_v37, %v4975_v51  ;;  %v467_v46 = vpop.permute.xlu1 %466  ;;  %3626 = vmatprep.mubr.f32.mxu1 %v4975_v51 }
 0x175   : > { %3984 = vset.pattern.permute.xlu1 %v5865_v61  ;;  %3627 = vmatmul.mubr.f32.gmra.mxu1 %v4967_v38  ;;  %v1448_v63 = vsub.f32 %v4971_v62, %v5823_v3  ;;  %vm521_vm8 = vcmp.eq.s32.totalorder %v467_v46, %v4363_v60 }
 0x176   : > { %496 = vperm.xlu1 %3984, %v4965_v40   ;;  %v5824_v25 = vand.u32 4294901760, %v4979_v59  ;;  %v3201_v46 = vsel %vm521_vm8, 1.0, %v5877_v52 }
 0x177   : > { %v1449_v2 = vand.u32 4294901760, %v1448_v63  ;;  %v3234_v63 = vsel %vm746_vm6, 1.0, %v5877_v52 }
 0x178   : > { %v1438_v28 = vsub.f32 %v4979_v59, %v5824_v25 }
 0x179   : > { %v246_v10 = vpop.permute.xlu1 %245 }
 0x17a   : > { %3985 = vset.pattern.permute.xlu1 %v5863_v48  ;;  %v1439_v20 = vand.u32 4294901760, %v1438_v28  ;;  %vm298_vm5 = vcmp.eq.s32.totalorder %v246_v10, %v4363_v60 }
 0x17b   : > { %275 = vperm.xlu1 %3985, %v4609_v57   ;;  %v3170_v48 = vsel %vm298_vm5, 1.0, %v5877_v52 }
 0x17c   : > { %3562 = vmatprep.mubr.f32.mxu0 %v1439_v20  ;;  %v3601_v20 = vpop.f32.mrf.mxu1 }
 0x17d   : > { %3563 = vmatmul.mubr.f32.gmra.mxu0 %v1449_v2 }
 0x17e   : > { %v470_v37 = vpop.permute.xlu1 %469 }
 0x17f   : > { %vm522_vm9 = vcmp.eq.s32.totalorder %v470_v37, %v4363_v60  ;;  %3986 = vset.pattern.permute.xlu1 %v5865_v61  ;;  %v617_v37 = vadd.f32 %v3201_v46, %v3169_v5 }
 0x180   : > { %v3202_v28 = vsel %vm522_vm9, 1.0, %v5877_v52  ;;  %499 = vperm.xlu1 %3986, %v4609_v57  }
 0x181   : > { %v618_v10 = vadd.f32 %v3202_v28, %v3170_v48  ;;  %v1682_v28 = vpop.f32.mrf.mxu1 }
 0x183   : > { %v842_v61 = vadd.f32 %v3234_v63, %v618_v10  ;;  %v691_v2 = vpop.permute.xlu1 %690 }
 0x184   : > { %vm745_vm13 = vcmp.eq.s32.totalorder %v691_v2, %v4363_v60  ;;  %3988 = vset.pattern.permute.xlu1 %v5867_v4  ;;  %v3537_v3 = vpop.f32.mrf.mxu0 }
 0x185   : > { %v1066_v7 = vadd.f32 %v3266_v27, %v842_v61  ;;  %v3233_v25 = vsel %vm745_vm13, 1.0, %v5877_v52  ;;  %v5014_v48 = vadd.f32 %v3601_v20, %v3537_v3  ;;  %720 = vperm.xlu1 %3988, %v4965_v40   ;;  %vm973_vm13 = vcmp.eq.s32.totalorder %v4738_v49, %v4363_v60 }
 0x186   : > { %v841_v63 = vadd.f32 %v3233_v25, %v617_v37  ;;  %v1261_v10 = vpop.f32.mrf.mxu0  ;;  %v3269_v56 = vsel %vm973_vm13, 1.0, %v5877_v52  ;;  %vm978_vm13 = vcmp.eq.s32.totalorder %v4776_v36, %v4363_v60 }
 0x187   : > { %5882 = vst [vmem:[#allocation24_spill] sm:$0xff] %v5014_v48  ;;  %v1150_v38 = vsel %vm1085_vm7, %v1066_v7, 0  ;;  %v5019_v46 = vadd.f32 %v1682_v28, %v1261_v10 }
 0x188   : > { %v5021_v5 = vand.u32 4294901760, %v1150_v38  ;;  %v1065_v4 = vadd.f32 %v3265_v13, %v841_v63  ;;  %v249_v2 = vpop.permute.xlu1 %248  ;;  %v700_v63 = vpop.permute.xlu0 %699 }
 0x189   : > { %5883 = vst [vmem:[#allocation25_spill] sm:$0xff] %v5019_v46  ;;  %3989 = vset.pattern.permute.xlu1 %v5873_v23  ;;  %vm748_vm15 = vcmp.eq.s32.totalorder %v700_v63, %v4363_v60  ;;  %vm299_vm2 = vcmp.eq.s32.totalorder %v249_v2, %v4363_v60 }
 0x18a   : > { %5884 = vst [vmem:[#allocation26_spill] sm:$0xff] %v5021_v5  ;;  %v5025_v3 = vsub.f32 %v1150_v38, %v5021_v5  ;;  %v1147_v20 = vsel %vm1085_vm7, %v1065_v4, 0  ;;  %944 = vperm.xlu1 %3989, %v4965_v40  }
 0x18b   : > { %v5029_v25 = vand.u32 4294901760, %v1147_v20 }
 0x18c   : > { %v5827_v61 = vand.u32 4294901760, %v5025_v3 }
 0x18d   : > { %v5033_v27 = vsub.f32 %v1147_v20, %v5029_v25  ;;  %v473_v37 = vpop.permute.xlu1 %472  ;;  %3629 = vmatprep.mubr.f32.mxu1 %v5029_v25 }
 0x18e   : > { %947 = vperm.xlu1 %3989, %v4609_v57   ;;  %3630 = vmatmul.mubr.f32.gmra.mxu1 %v5021_v5  ;;  %v1468_v38 = vsub.f32 %v5025_v3, %v5827_v61  ;;  %vm523_vm0 = vcmp.eq.s32.totalorder %v473_v37, %v4363_v60 }
 0x18f   : > { %v5828_v23 = vand.u32 4294901760, %v5033_v27  ;;  %v3604_v13 = vpop.f32.mrf.mxu1  ;;  %v3203_v37 = vsel %vm523_vm0, 1.0, %v5877_v52 }
 0x190   : > { %v1469_v10 = vand.u32 4294901760, %v1468_v38 }
 0x191   : > { %v1458_v40 = vsub.f32 %v5033_v27, %v5828_v23 }
 0x192   : > { %v252_v7 = vpop.permute.xlu1 %251 }
 0x193   : > { %v1459_v28 = vand.u32 4294901760, %v1458_v40  ;;  %vm300_vm14 = vcmp.eq.s32.totalorder %v252_v7, %v4363_v60  ;;  %v1694_v40 = vpop.f32.mrf.mxu1  ;;  %v3236_v7 = vsel %vm748_vm15, 1.0, %v5877_v52 }
 0x194   : > { %v3172_v38 = vsel %vm300_vm14, 1.0, %v5877_v52 }
 0x195   : > { %3565 = vmatprep.mubr.f32.mxu0 %v1459_v28 }
 0x196   : > { %3566 = vmatmul.mubr.f32.gmra.mxu0 %v1469_v10 }
 0x197   : > { %v476_v57 = vpop.permute.xlu1 %475  ;;  %v3540_v4 = vpop.f32.mrf.mxu0 }
 0x198   : > { %vm524_vm1 = vcmp.eq.s32.totalorder %v476_v57, %v4363_v60  ;;  %v5049_v20 = vadd.f32 %v3604_v13, %v3540_v4  ;;  %v3171_v13 = vsel %vm299_vm2, 1.0, %v5877_v52  ;;  %v3268_v4 = vsel %vm972_vm3, 1.0, %v5877_v52 }
 0x199   : > { %v3204_v28 = vsel %vm524_vm1, 1.0, %v5877_v52  ;;  %v1281_v61 = vpop.f32.mrf.mxu0  ;;  %v619_v23 = vadd.f32 %v3203_v37, %v3171_v13 }
 0x19a   : > { %5885 = vst [vmem:[#allocation27_spill] sm:$0xff] %v5049_v20  ;;  %v620_v63 = vadd.f32 %v3204_v28, %v3172_v38  ;;  %v5058_v10 = vadd.f32 %v1694_v40, %v1281_v61  ;;  %v3267_v38 = vsel %vm971_vm4, 1.0, %v5877_v52  ;;  %vm976_vm4 = vcmp.eq.s32.totalorder %v4759_v14, %v4363_v60 }
 0x19c   : > { %5886 = vst [vmem:[#allocation28_spill] sm:$0xff] %v5058_v10  ;;  %v844_v57 = vadd.f32 %v3236_v7, %v620_v63  ;;  %v697_v2 = vpop.permute.xlu1 %696 }
 0x19d   : > { %vm747_vm5 = vcmp.eq.s32.totalorder %v697_v2, %v4363_v60 }
 0x19e   : > { %v1068_v20 = vadd.f32 %v3268_v4, %v844_v57  ;;  %v3235_v39 = vsel %vm747_vm5, 1.0, %v5877_v52  ;;  %vm975_vm5 = vcmp.eq.s32.totalorder %v4753_v35, %v4363_v60 }
 0x19f   : > { %v843_v46 = vadd.f32 %v3235_v39, %v619_v23  ;;  %v3271_v14 = vsel %vm975_vm5, 1.0, %v5877_v52 }
 0x1a0   : > { %v1156_v61 = vsel %vm1085_vm7, %v1068_v20, 0 }
 0x1a1   : > { %v5068_v40 = vand.u32 4294901760, %v1156_v61  ;;  %v1067_v28 = vadd.f32 %v3267_v38, %v843_v46  ;;  %v255_v7 = vpop.permute.xlu1 %254 }
 0x1a2   : > { %v3607_v20 = vpop.f32.mrf.mxu1  ;;  %vm301_vm11 = vcmp.eq.s32.totalorder %v255_v7, %v4363_v60  ;;  %v3270_v7 = vsel %vm974_vm12, 1.0, %v5877_v52 }
 0x1a3   : > { %5887 = vst [vmem:[#allocation29_spill] sm:$0xff] %v5068_v40  ;;  %v5071_v63 = vsub.f32 %v1156_v61, %v5068_v40  ;;  %v1153_v41 = vsel %vm1085_vm7, %v1067_v28, 0  ;;  %v706_v28 = vpop.permute.xlu0 %705 }
 0x1a4   : > { %v5074_v37 = vand.u32 4294901760, %v1153_v41  ;;  %vm750_vm8 = vcmp.eq.s32.totalorder %v706_v28, %v4363_v60 }
 0x1a5   : > { %v5833_v13 = vand.u32 4294901760, %v5071_v63 }
 0x1a6   : > { %5888 = vst [vmem:[#allocation30_spill] sm:$0xff] %v5074_v37  ;;  %v5078_v57 = vsub.f32 %v1153_v41, %v5074_v37  ;;  %v479_v23 = vpop.permute.xlu1 %478  ;;  %3632 = vmatprep.mubr.f32.mxu1 %v5074_v37  ;;  %v1706_v41 = vpop.f32.mrf.mxu1 }
 0x1a7   : > { %3633 = vmatmul.mubr.f32.gmra.mxu1 %v5068_v40  ;;  %v1488_v2 = vsub.f32 %v5071_v63, %v5833_v13  ;;  %vm525_vm9 = vcmp.eq.s32.totalorder %v479_v23, %v4363_v60 }
 0x1a8   : > { %v5834_v46 = vand.u32 4294901760, %v5078_v57 }
 0x1a9   : > { %v1489_v37 = vand.u32 4294901760, %v1488_v2  ;;  %v3173_v2 = vsel %vm301_vm11, 1.0, %v5877_v52 }
 0x1aa   : > { %v3543_v4 = vpop.f32.mrf.mxu0  ;;  %v1478_v39 = vsub.f32 %v5078_v57, %v5834_v46 }
 0x1ab   : > { %v5089_v38 = vadd.f32 %v3607_v20, %v3543_v4  ;;  %v258_v61 = vpop.permute.xlu1 %257 }
 0x1ac   : > { %v1301_v10 = vpop.f32.mrf.mxu0  ;;  %v1479_v48 = vand.u32 4294901760, %v1478_v39  ;;  %vm302_vm6 = vcmp.eq.s32.totalorder %v258_v61, %v4363_v60 }
 0x1ad   : > { %5889 = vst [vmem:[#allocation31_spill] sm:$0xff] %v5089_v38  ;;  %v5091_v40 = vadd.f32 %v1706_v41, %v1301_v10  ;;  %v3174_v20 = vsel %vm302_vm6, 1.0, %v5877_v52  ;;  %v3238_v10 = vsel %vm750_vm8, 1.0, %v5877_v52 }
 0x1ae   : > { %3568 = vmatprep.mubr.f32.mxu0 %v1479_v48  ;;  %v3205_v48 = vsel %vm525_vm9, 1.0, %v5877_v52 }
 0x1af   : > { %5890 = vst [vmem:[#allocation32_spill] sm:$0xff] %v5091_v40  ;;  %3569 = vmatmul.mubr.f32.gmra.mxu0 %v1489_v37 }
 0x1b0   : > { %v482_v13 = vpop.permute.xlu1 %481 }
 0x1b1   : > { %vm526_vm10 = vcmp.eq.s32.totalorder %v482_v13, %v4363_v60  ;;  %v621_v13 = vadd.f32 %v3205_v48, %v3173_v2 }
 0x1b2   : > { %v3206_v4 = vsel %vm526_vm10, 1.0, %v5877_v52 }
 0x1b3   : > { %v622_v37 = vadd.f32 %v3206_v4, %v3174_v20 }
 0x1b5   : > { %v846_v23 = vadd.f32 %v3238_v10, %v622_v37  ;;  %v703_v39 = vpop.permute.xlu1 %702  ;;  %v3610_v37 = vpop.f32.mrf.mxu1 }
 0x1b6   : > { %vm749_vm14 = vcmp.eq.s32.totalorder %v703_v39, %v4363_v60 }
 0x1b7   : > { %v1070_v61 = vadd.f32 %v3270_v7, %v846_v23  ;;  %v3237_v28 = vsel %vm749_vm14, 1.0, %v5877_v52  ;;  %v1718_v39 = vpop.f32.mrf.mxu1  ;;  %vm977_vm14 = vcmp.eq.s32.totalorder %v4767_v47, %v4363_v60 }
 0x1b8   : > { %v845_v41 = vadd.f32 %v3237_v28, %v621_v13 }
 0x1b9   : > { %v1162_v20 = vsel %vm1085_vm7, %v1070_v61, 0 }
 0x1ba   : > { %v5112_v4 = vand.u32 4294901760, %v1162_v20  ;;  %v1069_v10 = vadd.f32 %v3269_v56, %v845_v41  ;;  %v261_v46 = vpop.permute.xlu1 %260 }
 0x1bb   : > { %vm303_vm3 = vcmp.eq.s32.totalorder %v261_v46, %v4363_v60  ;;  %v3272_v46 = vsel %vm976_vm4, 1.0, %v5877_v52 }
 0x1bc   : > { %5891 = vst [vmem:[#allocation33_spill] sm:$0xff] %v5112_v4  ;;  %v5115_v49 = vsub.f32 %v1162_v20, %v5112_v4  ;;  %v1159_v48 = vsel %vm1085_vm7, %v1069_v10, 0  ;;  %v3613_v10 = vpop.f32.mrf.mxu1 }
 0x1bd   : > { %v5118_v2 = vand.u32 4294901760, %v1159_v48  ;;  %v3546_v23 = vpop.f32.mrf.mxu0 }
 0x1be   : > { %v5120_v7 = vadd.f32 %v3610_v37, %v3546_v23  ;;  %v5839_v13 = vand.u32 4294901760, %v5115_v49 }
 0x1bf   : > { %5892 = vst [vmem:[#allocation34_spill] sm:$0xff] %v5118_v2  ;;  %v5124_v61 = vsub.f32 %v1159_v48, %v5118_v2  ;;  %v485_v28 = vpop.permute.xlu1 %484  ;;  %v1321_v41 = vpop.f32.mrf.mxu0  ;;  %3635 = vmatprep.mubr.f32.mxu1 %v5118_v2 }
 0x1c0   : > { %5893 = vst [vmem:[#allocation35_spill] sm:$0xff] %v5120_v7  ;;  %v5127_v56 = vadd.f32 %v1718_v39, %v1321_v41  ;;  %3636 = vmatmul.mubr.f32.gmra.mxu1 %v5112_v4  ;;  %v1508_v37 = vsub.f32 %v5115_v49, %v5839_v13  ;;  %v712_v39 = vpop.permute.xlu0 %711  ;;  %v1730_v41 = vpop.f32.mrf.mxu1  ;;  %vm527_vm1 = vcmp.eq.s32.totalorder %v485_v28, %v4363_v60 }
 0x1c1   : > { %v5840_v20 = vand.u32 4294901760, %v5124_v61  ;;  %vm752_vm0 = vcmp.eq.s32.totalorder %v712_v39, %v4363_v60 }
 0x1c2   : > { %5894 = vst [vmem:[#allocation36_spill] sm:$0xff] %v5127_v56  ;;  %v1509_v4 = vand.u32 4294901760, %v1508_v37  ;;  %v3175_v37 = vsel %vm303_vm3, 1.0, %v5877_v52 }
 0x1c3   : > { %v1498_v48 = vsub.f32 %v5124_v61, %v5840_v20 }
 0x1c4   : > { %v264_v23 = vpop.permute.xlu1 %263  ;;  %v3549_v7 = vpop.f32.mrf.mxu0 }
 0x1c5   : > { %v5137_v40 = vadd.f32 %v3613_v10, %v3549_v7  ;;  %v1499_v38 = vand.u32 4294901760, %v1498_v48  ;;  %vm304_vm15 = vcmp.eq.s32.totalorder %v264_v23, %v4363_v60 }
 0x1c6   : > { %v1341_v56 = vpop.f32.mrf.mxu0  ;;  %v3176_v7 = vsel %vm304_vm15, 1.0, %v5877_v52 }
 0x1c7   : > { %5895 = vst [vmem:[#allocation37_spill] sm:$0xff] %v5137_v40  ;;  %v5139_v2 = vadd.f32 %v1730_v41, %v1341_v56  ;;  %3571 = vmatprep.mubr.f32.mxu0 %v1499_v38  ;;  %v3240_v56 = vsel %vm752_vm0, 1.0, %v5877_v52  ;;  %v3207_v38 = vsel %vm527_vm1, 1.0, %v5877_v52 }
 0x1c8   : > { %3572 = vmatmul.mubr.f32.gmra.mxu0 %v1509_v4 }
 0x1c9   : > { %5896 = vst [vmem:[#allocation38_spill] sm:$0xff] %v5139_v2  ;;  %v488_v13 = vpop.permute.xlu1 %487 }
 0x1ca   : > { %vm528_vm2 = vcmp.eq.s32.totalorder %v488_v13, %v4363_v60  ;;  %v623_v13 = vadd.f32 %v3207_v38, %v3175_v37 }
 0x1cb   : > { %v3208_v10 = vsel %vm528_vm2, 1.0, %v5877_v52 }
 0x1cc   : > { %v624_v4 = vadd.f32 %v3208_v10, %v3176_v7 }
 0x1ce   : > { %v848_v28 = vadd.f32 %v3240_v56, %v624_v4  ;;  %v709_v48 = vpop.permute.xlu1 %708 }
 0x1cf   : > { %vm751_vm6 = vcmp.eq.s32.totalorder %v709_v48, %v4363_v60 }
 0x1d0   : > { %v1072_v23 = vadd.f32 %v3272_v46, %v848_v28  ;;  %v3239_v39 = vsel %vm751_vm6, 1.0, %v5877_v52 }
 0x1d1   : > { %v847_v41 = vadd.f32 %v3239_v39, %v623_v13 }
 0x1d2   : > { %v1168_v7 = vsel %vm1085_vm7, %v1072_v23, 0 }
 0x1d3   : > { %v5160_v10 = vand.u32 4294901760, %v1168_v7  ;;  %v1071_v56 = vadd.f32 %v3271_v14, %v847_v41  ;;  %v267_v4 = vpop.permute.xlu1 %266 }
 0x1d4   : > { %vm305_vm12 = vcmp.eq.s32.totalorder %v267_v4, %v4363_v60  ;;  %v3274_v4 = vsel %vm978_vm13, 1.0, %v5877_v52 }
 0x1d5   : > { %5897 = vst [vmem:[#allocation39_spill] sm:$0xff] %v5160_v10  ;;  %v5163_v20 = vsub.f32 %v1168_v7, %v5160_v10  ;;  %v1165_v35 = vsel %vm1085_vm7, %v1071_v56, 0  ;;  %v718_v7 = vpop.permute.xlu0 %717 }
 0x1d6   : > { %v5166_v38 = vand.u32 4294901760, %v1165_v35  ;;  %vm754_vm10 = vcmp.eq.s32.totalorder %v718_v7, %v4363_v60 }
 0x1d7   : > { %v5841_v37 = vand.u32 4294901760, %v5163_v20 }
 0x1d8   : > { %5898 = vst [vmem:[#allocation40_spill] sm:$0xff] %v5166_v38  ;;  %v5170_v28 = vsub.f32 %v1165_v35, %v5166_v38  ;;  %v491_v48 = vpop.permute.xlu1 %490  ;;  %3638 = vmatprep.mubr.f32.mxu1 %v5166_v38 }
 0x1d9   : > { %3639 = vmatmul.mubr.f32.gmra.mxu1 %v5160_v10  ;;  %v1528_v13 = vsub.f32 %v5163_v20, %v5841_v37  ;;  %vm529_vm9 = vcmp.eq.s32.totalorder %v491_v48, %v4363_v60  ;;  %v3242_v48 = vsel %vm754_vm10, 1.0, %v5877_v52 }
 0x1da   : > { %v5842_v46 = vand.u32 4294901760, %v5170_v28 }
 0x1db   : > { %v1529_v14 = vand.u32 4294901760, %v1528_v13  ;;  %v3209_v13 = vsel %vm529_vm9, 1.0, %v5877_v52 }
 0x1dc   : > { %v1518_v23 = vsub.f32 %v5170_v28, %v5842_v46 }
 0x1dd   : > { %v270_v39 = vpop.permute.xlu1 %269 }
 0x1de   : > { %v1519_v41 = vand.u32 4294901760, %v1518_v23  ;;  %vm306_vm8 = vcmp.eq.s32.totalorder %v270_v39, %v4363_v60  ;;  %v3177_v39 = vsel %vm305_vm12, 1.0, %v5877_v52 }
 0x1df   : > { %v3178_v35 = vsel %vm306_vm8, 1.0, %v5877_v52  ;;  %v625_v7 = vadd.f32 %v3209_v13, %v3177_v39 }
 0x1e0   : > { %3574 = vmatprep.mubr.f32.mxu0 %v1519_v41 }
 0x1e1   : > { %3575 = vmatmul.mubr.f32.gmra.mxu0 %v1529_v14 }
 0x1e2   : > { %v494_v56 = vpop.permute.xlu1 %493 }
 0x1e3   : > { %vm530_vm11 = vcmp.eq.s32.totalorder %v494_v56, %v4363_v60 }
 0x1e4   : > { %v3210_v37 = vsel %vm530_vm11, 1.0, %v5877_v52 }
 0x1e5   : > { %v626_v23 = vadd.f32 %v3210_v37, %v3178_v35  ;;  %v3273_v37 = vsel %vm977_vm14, 1.0, %v5877_v52 }
 0x1e7   : > { %v850_v41 = vadd.f32 %v3242_v48, %v626_v23  ;;  %v715_v14 = vpop.permute.xlu1 %714 }
 0x1e8   : > { %vm753_vm15 = vcmp.eq.s32.totalorder %v715_v14, %v4363_v60 }
 0x1e9   : > { %v1074_v56 = vadd.f32 %v3274_v4, %v850_v41  ;;  %v3241_v36 = vsel %vm753_vm15, 1.0, %v5877_v52 }
 0x1ea   : > { %v849_v46 = vadd.f32 %v3241_v36, %v625_v7 }
 0x1eb   : > { %v1174_v35 = vsel %vm1085_vm7, %v1074_v56, 0 }
 0x1ec   : > { %v1073_v2 = vadd.f32 %v3273_v37, %v849_v46  ;;  %v273_v40 = vpop.permute.xlu1 %272  ;;  %v5200_v23 = vand.u32 4294901760, %v1174_v35 }
 0x1ed   : > { %vm307_vm1 = vcmp.eq.s32.totalorder %v273_v40, %v4363_v60 }
 0x1ee   : > { %5899 = vst [vmem:[#allocation41_spill] sm:$0xff] %v5200_v23  ;;  %v1171_v48 = vsel %vm1085_vm7, %v1073_v2, 0  ;;  %v5204_v47 = vsub.f32 %v1174_v35, %v5200_v23 }
 0x1ef   : > { %v5206_v13 = vand.u32 4294901760, %v1171_v48 }
 0x1f0   : > { %v5851_v39 = vand.u32 4294901760, %v5204_v47 }
 0x1f1   : > { %5900 = vst [vmem:[#allocation42_spill] sm:$0xff] %v5206_v13  ;;  %v5210_v41 = vsub.f32 %v1171_v48, %v5206_v13  ;;  %v497_v14 = vpop.permute.xlu1 %496  ;;  %3641 = vmatprep.mubr.f32.mxu1 %v5206_v13 }
 0x1f2   : > { %3642 = vmatmul.mubr.f32.gmra.mxu1 %v5200_v23  ;;  %v1548_v2 = vsub.f32 %v5204_v47, %v5851_v39  ;;  %vm531_vm0 = vcmp.eq.s32.totalorder %v497_v14, %v4363_v60  ;;  %v3179_v14 = vsel %vm307_vm1, 1.0, %v5877_v52 }
 0x1f3   : > { %v5854_v46 = vand.u32 4294901760, %v5210_v41  ;;  %v3616_v4 = vpop.f32.mrf.mxu1 }
 0x1f4   : > { %v1549_v37 = vand.u32 4294901760, %v1548_v2 }
 0x1f5   : > { %v1538_v7 = vsub.f32 %v5210_v41, %v5854_v46  ;;  %v1742_v35 = vpop.f32.mrf.mxu1 }
 0x1f6   : > { %v276_v56 = vpop.permute.xlu1 %275 }
 0x1f7   : > { %v1539_v36 = vand.u32 4294901760, %v1538_v7  ;;  %v3619_v10 = vpop.f32.mrf.mxu1  ;;  %vm308_vm4 = vcmp.eq.s32.totalorder %v276_v56, %v4363_v60 }
 0x1f9   : > { %3577 = vmatprep.mubr.f32.mxu0 %v1539_v36  ;;  %v3211_v36 = vsel %vm531_vm0, 1.0, %v5877_v52 }
 0x1fa   : > { %3578 = vmatmul.mubr.f32.gmra.mxu0 %v1549_v37  ;;  %v1754_v37 = vpop.f32.mrf.mxu1 }
 0x1fb   : > { %v500_v48 = vpop.permute.xlu1 %499  ;;  %v3552_v13 = vpop.f32.mrf.mxu0 }
 0x1fc   : > { %v5221_v23 = vadd.f32 %v3616_v4, %v3552_v13  ;;  %vm532_vm2 = vcmp.eq.s32.totalorder %v500_v48, %v4363_v60 }
 0x1fd   : > { %v1361_v38 = vpop.f32.mrf.mxu0  ;;  %v3212_v40 = vsel %vm532_vm2, 1.0, %v5877_v52 }
 0x1fe   : > { %5901 = vst [vmem:[#allocation43_spill] sm:$0xff] %v5221_v23  ;;  %v5224_v39 = vadd.f32 %v1742_v35, %v1361_v38  ;;  %v724_v38 = vpop.permute.xlu0 %723 }
 0x1ff   : > { %v3555_v5 = vpop.f32.mrf.mxu0  ;;  %vm756_vm5 = vcmp.eq.s32.totalorder %v724_v38, %v4363_v60 }
 0x200   : > { %5902 = vst [vmem:[#allocation44_spill] sm:$0xff] %v5224_v39  ;;  %v5228_v7 = vadd.f32 %v3619_v10, %v3555_v5  ;;  %v721_v2 = vpop.permute.xlu1 %720  ;;  %v627_v5 = vadd.f32 %v3211_v36, %v3179_v14  ;;  %v3180_v10 = vsel %vm308_vm4, 1.0, %v5877_v52 }
 0x201   : > { %vm755_vm3 = vcmp.eq.s32.totalorder %v721_v2, %v4363_v60  ;;  %v1381_v13 = vpop.f32.mrf.mxu0  ;;  %v628_v46 = vadd.f32 %v3212_v40, %v3180_v10 }
 0x202   : > { %5903 = vst [vmem:[#allocation45_spill] sm:$0xff] %v5228_v7  ;;  %v5233_v4 = vadd.f32 %v1754_v37, %v1381_v13  ;;  %v3243_v35 = vsel %vm755_vm3, 1.0, %v5877_v52  ;;  %v3244_v13 = vsel %vm756_vm5, 1.0, %v5877_v52 }
 0x203   : > { %v851_v2 = vadd.f32 %v3243_v35, %v627_v5  ;;  %v852_v23 = vadd.f32 %v3244_v13, %v628_v46 }
 0x204   : > { %5904 = vst [vmem:[#allocation46_spill] sm:$0xff] %v5233_v4  ;;  %v3622_v4 = vpop.f32.mrf.mxu1 }
 0x205   : > { %v945_v48 = vpop.permute.xlu1 %944 }
 0x206   : > { %vm979_vm6 = vcmp.eq.s32.totalorder %v945_v48, %v4363_v60  ;;  %v1766_v10 = vpop.f32.mrf.mxu1 }
 0x207   : > { %v3275_v56 = vsel %vm979_vm6, 1.0, %v5877_v52 }
 0x208   : > { %v1075_v37 = vadd.f32 %v3275_v56, %v851_v2 }
 0x209   : > { %v948_v7 = vpop.permute.xlu1 %947 }
 0x20a   : > { %v1177_v39 = vsel %vm1085_vm7, %v1075_v37, 0  ;;  %vm980_vm8 = vcmp.eq.s32.totalorder %v948_v7, %v4363_v60  ;;  %v5906_v37 = vand.u32 4294901760, %v4413_v1 }
 0x20b   : > { %v5245_v36 = vand.u32 4294901760, %v1177_v39  ;;  %v3276_v38 = vsel %vm980_vm8, 1.0, %v5877_v52  ;;  %v3558_v14 = vpop.f32.mrf.mxu0 }
 0x20c   : > { %v1076_v40 = vadd.f32 %v3276_v38, %v852_v23  ;;  %v5248_v35 = vadd.f32 %v3622_v4, %v3558_v14  ;;  %v5907_v38 = vand.u32 4294901760, %v4492_v45 }
 0x20d   : > { %v5251_v5 = vsub.f32 %v1177_v39, %v5245_v36  ;;  %v1401_v48 = vpop.f32.mrf.mxu0  ;;  %3644 = vmatprep.mubr.f32.mxu1 %v5245_v36  ;;  %v5905_v39 = vand.u32 4294901760, %v4403_v18 }
 0x20e   : > { %v1180_v2 = vsel %vm1085_vm7, %v1076_v40, 0  ;;  %v5255_v46 = vadd.f32 %v1766_v10, %v1401_v48  ;;  %v5908_v40 = vand.u32 4294901760, %v4510_v55  ;;  %v5909_v10 = vand.u32 4294901760, %v4517_v31 }
 0x20f   : > { %v5257_v60 = vand.u32 4294901760, %v1180_v2  ;;  %v1557_v7 = vand.u32 4294901760, %v5251_v5  ;;  %v5915_v48 = vand.u32 4294901760, %v4741_v9 }
 0x211   : > { %v5261_v52 = vsub.f32 %v1180_v2, %v5257_v60  ;;  %3645 = vmatmul.mubr.f32.gmra.mxu1 %v5257_v60  ;;  %v1558_v23 = vsub.f32 %v5251_v5, %v1557_v7  ;;  %v5916_v2 = vld [vmem:[#allocation2_spill] sm:$0xff] }
 0x212   : > { %3727 = vmatprep.mubr.f32.mxu1 %v5905_v39  ;;  %v5924_v39 = vld [vmem:[#allocation6_spill] sm:$0xff] }
 0x213   : > { %v1559_v4 = vand.u32 4294901760, %v1558_v23  ;;  %v1567_v56 = vand.u32 4294901760, %v5261_v52  ;;  %v5920_v23 = vld [vmem:[#allocation5_spill] sm:$0xff] }
 0x215   : > { %3580 = vmatprep.mubr.f32.mxu0 %v1559_v4  ;;  %3728 = vmatmul.mubr.f32.vlgmr.msra.gmra.mxu1 %v5906_v37  ;;  %v1568_v13 = vsub.f32 %v5261_v52, %v1567_v56  ;;  %v5925_v4 = vld [vmem:[#allocation7_spill] sm:$0xff]  ;;  %v5928_v37 = vld [vmem:[#allocation8_spill] sm:$0xff] }
 0x216   : > { %3730 = vmatprep.mubr.f32.mxu1 %v5907_v38  ;;  %3840 = vmatpush3.msra.mxu1 %v4085_v12  ;;  %v5910_v12 = vand.u32 4294901760, %v4602_v32  ;;  %v5932_v38 = vand.u32 4294901760, %v4971_v62 }
 0x217   : > { %v1569_v14 = vand.u32 4294901760, %v1568_v13  ;;  %3841 = vmatprep.subr.mxu1 %v4096_v16  ;;  %v5929_v13 = vand.u32 4294901760, %v4921_v22 }
 0x218   : > { %3842 = vmatpush3.msra.mxu1 %v4096_v16  ;;  %v5911_v16 = vand.u32 4294901760, %v4589_v17 }
 0x219   : > { %3581 = vmatmul.mubr.f32.gmra.mxu0 %v1569_v14  ;;  %3731 = vmatmul.mubr.f32.gmra.mxu1 %v5908_v40 }
 0x21a   : > { %3663 = vmatprep.mubr.f32.mxu0 %v4403_v18  ;;  %3733 = vmatprep.mubr.f32.mxu1 %v5909_v10 }
 0x21b   : > { %3843 = vmatprep.subr.mxu1 %v4111_v21 }
 0x21c   : > { %3844 = vmatpush3.msra.mxu1 %v4111_v21  ;;  %v5912_v21 = vand.u32 4294901760, %v4676_v53  ;;  %v3625_v18 = vpop.f32.mrf.mxu1 }
 0x21d   : > { %3664 = vmatmul.mubr.f32.vlgmr.msra.gmra.mxu0 %v4413_v1  ;;  %3734 = vmatmul.mubr.f32.gmra.mxu1 %v5910_v12 }
 0x21e   : > { %3776 = vmatpush3.msra.mxu0 %v4106_v19  ;;  %3666 = vmatprep.mubr.f32.mxu0 %v4492_v45  ;;  %v5913_v19 = vand.u32 4294901760, %v4659_v58  ;;  %v5914_v45 = vand.u32 4294901760, %v4700_v43 }
 0x21f   : > { %3736 = vmatprep.mubr.f32.mxu1 %v5911_v16  ;;  %3777 = vmatprep.subr.mxu0 %v4121_v24 }
 0x220   : > { %3778 = vmatpush3.msra.mxu0 %v4121_v24  ;;  %3845 = vmatprep.subr.mxu1 %v4126_v26 }
 0x221   : > { %3667 = vmatmul.mubr.f32.gmra.mxu0 %v4510_v55  ;;  %3737 = vmatmul.mubr.f32.gmra.mxu1 %v5912_v21  ;;  %v1778_v55 = vpop.f32.mrf.mxu1  ;;  %v5936_v21 = vand.u32 4294901760, %v5071_v63 }
 0x222   : > { %3669 = vmatprep.mubr.f32.mxu0 %v4517_v31  ;;  %3739 = vmatprep.mubr.f32.mxu1 %v5913_v19 }
 0x223   : > { %3779 = vmatprep.subr.mxu0 %v4137_v30  ;;  %3846 = vmatpush3.msra.mxu1 %v4126_v26 }
 0x224   : > { %v3561_v1 = vpop.f32.mrf.mxu0  ;;  %3780 = vmatpush3.msra.mxu0 %v4137_v30  ;;  %3847 = vmatprep.subr.mxu1 %v4145_v33  ;;  %v5917_v30 = vld [vmem:[#allocation3_spill] sm:$0xff] }
 0x225   : > { %v5307_v24 = vadd.f32 %v3625_v18, %v3561_v1  ;;  %3670 = vmatmul.mubr.f32.gmra.mxu0 %v4602_v32  ;;  %3740 = vmatmul.mubr.f32.gmra.mxu1 %v5914_v45  ;;  %v5918_v32 = vand.u32 4294901760, %v4818_v8  ;;  %v5939_v18 = vand.u32 4294901760, %v5170_v28  ;;  %v5952_v45 = vld [vmem:[#allocation18_spill] sm:$0xff] }
 0x226   : > { %v1421_v31 = vpop.f32.mrf.mxu0  ;;  %3672 = vmatprep.mubr.f32.mxu0 %v4589_v17  ;;  %3742 = vmatprep.mubr.f32.mxu1 %v5915_v48  ;;  %v5919_v17 = vand.u32 4294901760, %v4801_v0  ;;  %v5956_v48 = vld [vmem:[#allocation21_spill] sm:$0xff] }
 0x227   : > { %v5315_v26 = vadd.f32 %v1778_v55, %v1421_v31  ;;  %3781 = vmatprep.subr.mxu0 %v5916_v2  ;;  %3848 = vmatpush3.msra.mxu1 %v4145_v33  ;;  %v5921_v33 = vld [vmem:[#allocation4_spill] sm:$0xff]  ;;  %v5954_v55 = vld [vmem:[#allocation19_spill] sm:$0xff] }
 0x228   : > { %3782 = vmatpush3.msra.mxu0 %v5916_v2  ;;  %3849 = vmatprep.subr.mxu1 %v5917_v30  ;;  %v5955_v31 = vld [vmem:[#allocation20_spill] sm:$0xff] }
 0x229   : > { %3673 = vmatmul.mubr.f32.gmra.mxu0 %v4676_v53  ;;  %3743 = vmatmul.mubr.f32.gmra.mxu1 %v5918_v32  ;;  %v5922_v53 = vand.u32 4294901760, %v4847_v11 }
 0x22a   : > { %3675 = vmatprep.mubr.f32.mxu0 %v4659_v58  ;;  %3745 = vmatprep.mubr.f32.mxu1 %v5919_v17  ;;  %v5923_v58 = vand.u32 4294901760, %v4879_v29 }
 0x22b   : > { %3783 = vmatprep.subr.mxu0 %v5920_v23  ;;  %3850 = vmatpush3.msra.mxu1 %v5917_v30  ;;  %v5957_v30 = vld [vmem:[#allocation22_spill] sm:$0xff] }
 0x22c   : > { %3784 = vmatpush3.msra.mxu0 %v5920_v23  ;;  %3851 = vmatprep.subr.mxu1 %v5921_v33 }
 0x22d   : > { %3676 = vmatmul.mubr.f32.gmra.mxu0 %v4700_v43  ;;  %3746 = vmatmul.mubr.f32.gmra.mxu1 %v5922_v53  ;;  %v5926_v43 = vand.u32 4294901760, %v4871_v34 }
 0x22e   : > { %3678 = vmatprep.mubr.f32.mxu0 %v4741_v9  ;;  %3748 = vmatprep.mubr.f32.mxu1 %v5923_v58  ;;  %v5927_v9 = vand.u32 4294901760, %v4929_v50  ;;  %v5960_v58 = vld [vmem:[#allocation23_spill] sm:$0xff] }
 0x22f   : > { %3785 = vmatprep.subr.mxu0 %v5924_v39  ;;  %3852 = vmatpush3.msra.mxu1 %v5921_v33 }
 0x230   : > { %3786 = vmatpush3.msra.mxu0 %v5924_v39  ;;  %3853 = vmatprep.subr.mxu1 %v5925_v4  ;;  %v5962_v39 = vld [vmem:[#allocation30_spill] sm:$0xff] }
 0x231   : > { %3679 = vmatmul.mubr.f32.gmra.mxu0 %v4818_v8  ;;  %3749 = vmatmul.mubr.f32.gmra.mxu1 %v5926_v43  ;;  %v5930_v8 = vand.u32 4294901760, %v4979_v59 }
 0x232   : > { %3681 = vmatprep.mubr.f32.mxu0 %v4801_v0  ;;  %3751 = vmatprep.mubr.f32.mxu1 %v5927_v9  ;;  %v5931_v0 = vld [vmem:[#allocation9_spill] sm:$0xff]  ;;  %v5968_v9 = vld [vmem:[#allocation39_spill] sm:$0xff] }
 0x233   : > { %3787 = vmatprep.subr.mxu0 %v5928_v37  ;;  %3854 = vmatpush3.msra.mxu1 %v5925_v4 }
 0x234   : > { %3788 = vmatpush3.msra.mxu0 %v5928_v37 }
 0x235   : > { %3682 = vmatmul.mubr.f32.gmra.mxu0 %v4847_v11  ;;  %3752 = vmatmul.mubr.f32.gmra.mxu1 %v5929_v13  ;;  %v5933_v11 = vand.u32 4294901760, %v5033_v27  ;;  %v3628_v14 = vpop.f32.mrf.mxu1  ;;  %v5969_v13 = vld [vmem:[#allocation42_spill] sm:$0xff] }
 0x236   : > { %3684 = vmatprep.mubr.f32.mxu0 %v4879_v29  ;;  %3754 = vmatprep.mubr.f32.mxu1 %v5930_v8  ;;  %v5934_v29 = vand.u32 4294901760, %v5025_v3 }
 0x237   : > { %3789 = vmatprep.subr.mxu0 %v5931_v0  ;;  %v1790_v12 = vpop.f32.mrf.mxu1 }
 0x238   : > { %3790 = vmatpush3.msra.mxu0 %v5931_v0  ;;  %v5971_v0 = vld [vmem:[#allocation41_spill] sm:$0xff] }
 0x239   : > { %3685 = vmatmul.mubr.f32.gmra.mxu0 %v4871_v34  ;;  %3755 = vmatmul.mubr.f32.gmra.mxu1 %v5932_v38  ;;  %v5935_v34 = vand.u32 4294901760, %v5078_v57 }
 0x23a   : > { %3687 = vmatprep.mubr.f32.mxu0 %v4929_v50  ;;  %3757 = vmatprep.mubr.f32.mxu1 %v5933_v11 }
 0x23d   : > { %v3564_v40 = vpop.f32.mrf.mxu0  ;;  %3688 = vmatmul.mubr.f32.gmra.mxu0 %v4921_v22  ;;  %3758 = vmatmul.mubr.f32.gmra.mxu1 %v5934_v29  ;;  %v5937_v22 = vand.u32 4294901760, %v5124_v61 }
 0x23e   : > { %v5367_v10 = vadd.f32 %v3628_v14, %v3564_v40  ;;  %3690 = vmatprep.mubr.f32.mxu0 %v4979_v59  ;;  %3760 = vmatprep.mubr.f32.mxu1 %v5935_v34  ;;  %v5938_v59 = vand.u32 4294901760, %v5115_v49 }
 0x23f   : > { %v1441_v16 = vpop.f32.mrf.mxu0 }
 0x240   : > { %v5372_v50 = vadd.f32 %v1790_v12, %v1441_v16 }
 0x241   : > { %3691 = vmatmul.mubr.f32.gmra.mxu0 %v4971_v62  ;;  %3761 = vmatmul.mubr.f32.gmra.mxu1 %v5936_v21  ;;  %v5940_v62 = vand.u32 4294901760, %v5163_v20 }
 0x242   : > { %3693 = vmatprep.mubr.f32.mxu0 %v5033_v27  ;;  %3763 = vmatprep.mubr.f32.mxu1 %v5937_v22  ;;  %v5941_v27 = vand.u32 4294901760, %v5210_v41 }
 0x245   : > { %3694 = vmatmul.mubr.f32.gmra.mxu0 %v5025_v3  ;;  %3764 = vmatmul.mubr.f32.gmra.mxu1 %v5938_v59  ;;  %v5942_v3 = vand.u32 4294901760, %v5204_v47 }
 0x246   : > { %3696 = vmatprep.mubr.f32.mxu0 %v5078_v57  ;;  %3766 = vmatprep.mubr.f32.mxu1 %v5939_v18 }
 0x249   : > { %3697 = vmatmul.mubr.f32.gmra.mxu0 %v5071_v63  ;;  %3767 = vmatmul.mubr.f32.gmra.mxu1 %v5940_v62  ;;  %v5943_v63 = vld [vmem:[#allocation10_spill] sm:$0xff] }
 0x24a   : > { %3699 = vmatprep.mubr.f32.mxu0 %v5124_v61  ;;  %3769 = vmatprep.mubr.f32.mxu1 %v5941_v27 }
 0x24d   : > { %3700 = vmatmul.mubr.f32.gmra.mxu0 %v5115_v49  ;;  %3770 = vmatmul.mubr.f32.gmra.mxu1 %v5942_v3  ;;  %v5944_v49 = vld [vmem:[#allocation11_spill] sm:$0xff] }
 0x24e   : > { %3702 = vmatprep.mubr.f32.mxu0 %v5170_v28  ;;  %3772 = vmatprep.mubr.f32.mxu1 %v1557_v7  ;;  %v3631_v57 = vpop.f32.mrf.mxu1  ;;  %v5945_v28 = vld [vmem:[#allocation12_spill] sm:$0xff] }
 0x251   : > { %3703 = vmatmul.mubr.f32.gmra.mxu0 %v5163_v20  ;;  %3773 = vmatmul.mubr.f32.gmra.mxu1 %v1567_v56  ;;  %v1802_v20 = vpop.f32.mrf.mxu1  ;;  %v5950_v56 = vld [vmem:[#allocation16_spill] sm:$0xff] }
 0x252   : > { %3705 = vmatprep.mubr.f32.mxu0 %v5210_v41  ;;  %3855 = vmatprep.mubr.f32.mxu1 %v5943_v63  ;;  %v5948_v41 = vld [vmem:[#allocation13_spill] sm:$0xff] }
 0x255   : > { %3706 = vmatmul.mubr.f32.gmra.mxu0 %v5204_v47  ;;  %3856 = vmatmul.mubr.f32.vlgmr.msra.gmra.mxu1 %v5944_v49  ;;  %v5949_v47 = vld [vmem:[#allocation14_spill] sm:$0xff] }
 0x256   : > { %v3567_v61 = vpop.f32.mrf.mxu0  ;;  %3708 = vmatprep.mubr.f32.mxu0 %v5251_v5  ;;  %3858 = vmatprep.mubr.f32.mxu1 %v5945_v28  ;;  %v5951_v5 = vld [vmem:[#allocation15_spill] sm:$0xff] }
 0x257   : > { %v5407_v7 = vadd.f32 %v3631_v57, %v3567_v61 }
 0x258   : > { %v1461_v19 = vpop.f32.mrf.mxu0 }
 0x259   : > { %5946 = vst [vmem:[#allocation2_spill] sm:$0xff] %v5407_v7  ;;  %v5409_v1 = vadd.f32 %v1802_v20, %v1461_v19  ;;  %3709 = vmatmul.mubr.f32.gmra.mxu0 %v5261_v52  ;;  %3859 = vmatmul.mubr.f32.gmra.mxu1 %v5948_v41  ;;  %v5953_v52 = vld [vmem:[#allocation17_spill] sm:$0xff]  ;;  %v6010_v7 = vld [vmem:[#allocation35_spill] sm:$0xff] }
 0x25a   : > { %3791 = vmatprep.mubr.f32.mxu0 %v5943_v63  ;;  %3861 = vmatprep.mubr.f32.mxu1 %v5949_v47 }
 0x25b   : > { %5947 = vst [vmem:[#allocation3_spill] sm:$0xff] %v5409_v1  ;;  %v6007_v1 = vld [vmem:[#allocation28_spill] sm:$0xff] }
 0x25d   : > { %3792 = vmatmul.mubr.f32.vlgmr.msra.gmra.mxu0 %v5944_v49  ;;  %3862 = vmatmul.mubr.f32.gmra.mxu1 %v5950_v56 }
 0x25e   : > { %3794 = vmatprep.mubr.f32.mxu0 %v5945_v28  ;;  %3864 = vmatprep.mubr.f32.mxu1 %v5951_v5 }
 0x261   : > { %3795 = vmatmul.mubr.f32.gmra.mxu0 %v5948_v41  ;;  %3865 = vmatmul.mubr.f32.gmra.mxu1 %v5952_v45 }
 0x262   : > { %3797 = vmatprep.mubr.f32.mxu0 %v5949_v47  ;;  %3867 = vmatprep.mubr.f32.mxu1 %v5953_v52 }
 0x265   : > { %3798 = vmatmul.mubr.f32.gmra.mxu0 %v5950_v56  ;;  %3868 = vmatmul.mubr.f32.gmra.mxu1 %v5954_v55 }
 0x266   : > { %3800 = vmatprep.mubr.f32.mxu0 %v5951_v5  ;;  %3870 = vmatprep.mubr.f32.mxu1 %v5955_v31 }
 0x267   : > { %v3634_v2 = vpop.f32.mrf.mxu1 }
 0x269   : > { %3801 = vmatmul.mubr.f32.gmra.mxu0 %v5952_v45  ;;  %3871 = vmatmul.mubr.f32.gmra.mxu1 %v4809_v54  ;;  %v1814_v23 = vpop.f32.mrf.mxu1 }
 0x26a   : > { %3803 = vmatprep.mubr.f32.mxu0 %v5953_v52  ;;  %3873 = vmatprep.mubr.f32.mxu1 %v5956_v48 }
 0x26d   : > { %3804 = vmatmul.mubr.f32.gmra.mxu0 %v5954_v55  ;;  %3874 = vmatmul.mubr.f32.gmra.mxu1 %v5957_v30 }
 0x26e   : > { %3806 = vmatprep.mubr.f32.mxu0 %v5955_v31  ;;  %3876 = vmatprep.mubr.f32.mxu1 %v4875_v15 }
 0x26f   : > { %v3570_v32 = vpop.f32.mrf.mxu0 }
 0x270   : > { %v5435_v17 = vadd.f32 %v3634_v2, %v3570_v32 }
 0x271   : > { %v1481_v33 = vpop.f32.mrf.mxu0  ;;  %3807 = vmatmul.mubr.f32.gmra.mxu0 %v4809_v54  ;;  %3877 = vmatmul.mubr.f32.gmra.mxu1 %v4867_v42  ;;  %v5961_v54 = vld [vmem:[#allocation26_spill] sm:$0xff] }
 0x272   : > { %5958 = vst [vmem:[#allocation5_spill] sm:$0xff] %v5435_v17  ;;  %v5439_v53 = vadd.f32 %v1814_v23, %v1481_v33  ;;  %3809 = vmatprep.mubr.f32.mxu0 %v5956_v48  ;;  %3879 = vmatprep.mubr.f32.mxu1 %v4925_v6 }
 0x274   : > { %5959 = vst [vmem:[#allocation4_spill] sm:$0xff] %v5439_v53 }
 0x275   : > { %3810 = vmatmul.mubr.f32.gmra.mxu0 %v5957_v30  ;;  %3880 = vmatmul.mubr.f32.gmra.mxu1 %v4917_v44 }
 0x276   : > { %3812 = vmatprep.mubr.f32.mxu0 %v4875_v15  ;;  %3882 = vmatprep.mubr.f32.mxu1 %v4975_v51  ;;  %v5963_v15 = vld [vmem:[#allocation29_spill] sm:$0xff] }
 0x279   : > { %3813 = vmatmul.mubr.f32.gmra.mxu0 %v4867_v42  ;;  %3883 = vmatmul.mubr.f32.gmra.mxu1 %v5960_v58  ;;  %v5964_v42 = vld [vmem:[#allocation34_spill] sm:$0xff] }
 0x27a   : > { %3815 = vmatprep.mubr.f32.mxu0 %v4925_v6  ;;  %3885 = vmatprep.mubr.f32.mxu1 %v5029_v25  ;;  %v5965_v6 = vld [vmem:[#allocation33_spill] sm:$0xff] }
 0x27d   : > { %3816 = vmatmul.mubr.f32.gmra.mxu0 %v4917_v44  ;;  %3886 = vmatmul.mubr.f32.gmra.mxu1 %v5961_v54  ;;  %v5966_v44 = vld [vmem:[#allocation40_spill] sm:$0xff] }
 0x27e   : > { %3818 = vmatprep.mubr.f32.mxu0 %v4975_v51  ;;  %3888 = vmatprep.mubr.f32.mxu1 %v5962_v39 }
 0x280   : > { %v3637_v4 = vpop.f32.mrf.mxu1 }
 0x281   : > { %3819 = vmatmul.mubr.f32.gmra.mxu0 %v5960_v58  ;;  %3889 = vmatmul.mubr.f32.gmra.mxu1 %v5963_v15 }
 0x282   : > { %3821 = vmatprep.mubr.f32.mxu0 %v5029_v25  ;;  %3891 = vmatprep.mubr.f32.mxu1 %v5964_v42  ;;  %v1826_v37 = vpop.f32.mrf.mxu1 }
 0x285   : > { %3822 = vmatmul.mubr.f32.gmra.mxu0 %v5961_v54  ;;  %3892 = vmatmul.mubr.f32.gmra.mxu1 %v5965_v6 }
 0x286   : > { %3824 = vmatprep.mubr.f32.mxu0 %v5962_v39  ;;  %3894 = vmatprep.mubr.f32.mxu1 %v5966_v44 }
 0x288   : > { %v3573_v51 = vpop.f32.mrf.mxu0 }
 0x289   : > { %v5463_v43 = vadd.f32 %v3637_v4, %v3573_v51  ;;  %3825 = vmatmul.mubr.f32.gmra.mxu0 %v5963_v15  ;;  %3895 = vmatmul.mubr.f32.gmra.mxu1 %v5968_v9 }
 0x28a   : > { %v1501_v25 = vpop.f32.mrf.mxu0  ;;  %3827 = vmatprep.mubr.f32.mxu0 %v5964_v42  ;;  %3897 = vmatprep.mubr.f32.mxu1 %v5969_v13 }
 0x28b   : > { %5967 = vst [vmem:[#allocation6_spill] sm:$0xff] %v5463_v43  ;;  %v5469_v8 = vadd.f32 %v1826_v37, %v1501_v25 }
 0x28d   : > { %5970 = vst [vmem:[#allocation7_spill] sm:$0xff] %v5469_v8  ;;  %3828 = vmatmul.mubr.f32.gmra.mxu0 %v5965_v6  ;;  %3898 = vmatmul.mubr.f32.gmra.mxu1 %v5971_v0 }
 0x28e   : > { %3830 = vmatprep.mubr.f32.mxu0 %v5966_v44  ;;  %3900 = vmatprep.mubr.f32.mxu1 %v5245_v36 }
 0x291   : > { %3831 = vmatmul.mubr.f32.gmra.mxu0 %v5968_v9  ;;  %3901 = vmatmul.mubr.f32.gmra.mxu1 %v5257_v60 }
 0x292   : > { %3833 = vmatprep.mubr.f32.mxu0 %v5969_v13 }
 0x295   : > { %3834 = vmatmul.mubr.f32.gmra.mxu0 %v5971_v0 }
 0x296   : > { %3836 = vmatprep.mubr.f32.mxu0 %v5245_v36 }
 0x299   : > { %3837 = vmatmul.mubr.f32.gmra.mxu0 %v5257_v60  ;;  %v3640_v38 = vpop.f32.mrf.mxu1 }
 0x29b   : > { %v1838_v40 = vpop.f32.mrf.mxu1 }
 0x2a1   : > { %v3576_v11 = vpop.f32.mrf.mxu0 }
 0x2a2   : > { %v5481_v14 = vadd.f32 %v3640_v38, %v3576_v11 }
 0x2a3   : > { %v1521_v29 = vpop.f32.mrf.mxu0 }
 0x2a4   : > { %5972 = vst [vmem:[#allocation8_spill] sm:$0xff] %v5481_v14  ;;  %v5483_v34 = vadd.f32 %v1838_v40, %v1521_v29 }
 0x2a6   : > { %5973 = vst [vmem:[#allocation9_spill] sm:$0xff] %v5483_v34 }
 0x2b2   : > { %v3643_v12 = vpop.f32.mrf.mxu1 }
 0x2b4   : > { %v1850_v22 = vpop.f32.mrf.mxu1 }
 0x2ba   : > { %v3579_v16 = vpop.f32.mrf.mxu0 }
 0x2bb   : > { %v5485_v21 = vadd.f32 %v3643_v12, %v3579_v16 }
 0x2bc   : > { %v1541_v59 = vpop.f32.mrf.mxu0 }
 0x2bd   : > { %5974 = vst [vmem:[#allocation10_spill] sm:$0xff] %v5485_v21  ;;  %v5487_v18 = vadd.f32 %v1850_v22, %v1541_v59 }
 0x2bf   : > { %5975 = vst [vmem:[#allocation11_spill] sm:$0xff] %v5487_v18 }
 0x2d1   : > { %v3646_v62 = vpop.f32.mrf.mxu1 }
 0x2d3   : > { %v1862_v36 = vpop.f32.mrf.mxu1 }
 0x2d5   : > { %v5489_v27 = vpop.f32.mrf.mxu1 }
 0x2d7   : > { %v5491_v60 = vpop.f32.mrf.mxu1 }
 0x2d9   : > { %v3582_v3 = vpop.f32.mrf.mxu0  ;;  %v5493_v63 = vpop.f32.mrf.mxu1 }
 0x2da   : > { %v5495_v57 = vadd.f32 %v3646_v62, %v3582_v3 }
 0x2db   : > { %v1561_v49 = vpop.f32.mrf.mxu0  ;;  %v5497_v61 = vpop.f32.mrf.mxu1 }
 0x2dc   : > { %5976 = vst [vmem:[#allocation12_spill] sm:$0xff] %v5495_v57  ;;  %v5499_v28 = vadd.f32 %v1862_v36, %v1561_v49 }
 0x2dd   : > { %v3665_v20 = vpop.f32.mrf.mxu0  ;;  %v5501_v19 = vpop.f32.mrf.mxu1 }
 0x2de   : > { %5977 = vst [vmem:[#allocation13_spill] sm:$0xff] %v5499_v28 }
 0x2df   : > { %v1956_v41 = vpop.f32.mrf.mxu0  ;;  %v5503_v47 = vpop.f32.mrf.mxu1 }
 0x2e1   : > { %v3668_v56 = vpop.f32.mrf.mxu0  ;;  %v5505_v5 = vpop.f32.mrf.mxu1 }
 0x2e3   : > { %v5507_v45 = vpop.f32.mrf.mxu0  ;;  %v5509_v52 = vpop.f32.mrf.mxu1 }
 0x2e5   : > { %v5511_v55 = vpop.f32.mrf.mxu0  ;;  %v5513_v31 = vpop.f32.mrf.mxu1 }
 0x2e7   : > { %v5515_v48 = vpop.f32.mrf.mxu0  ;;  %v5517_v2 = vpop.f32.mrf.mxu1 }
 0x2e9   : > { %v5519_v30 = vpop.f32.mrf.mxu0  ;;  %v5521_v32 = vpop.f32.mrf.mxu1 }
 0x2eb   : > { %v5523_v23 = vpop.f32.mrf.mxu0  ;;  %v5525_v33 = vpop.f32.mrf.mxu1 }
 0x2ed   : > { %v5527_v58 = vpop.f32.mrf.mxu0  ;;  %v5529_v54 = vpop.f32.mrf.mxu1 }
 0x2ef   : > { %v5531_v39 = vpop.f32.mrf.mxu0  ;;  %v5533_v15 = vpop.f32.mrf.mxu1 }
 0x2f1   : > { %v5535_v42 = vpop.f32.mrf.mxu0  ;;  %v5537_v6 = vpop.f32.mrf.mxu1 }
 0x2f3   : > { %v5539_v4 = vpop.f32.mrf.mxu0  ;;  %v5541_v44 = vpop.f32.mrf.mxu1 }
 0x2f5   : > { %v5543_v51 = vpop.f32.mrf.mxu0  ;;  %v5545_v9 = vpop.f32.mrf.mxu1 }
 0x2f7   : > { %v5547_v37 = vpop.f32.mrf.mxu0  ;;  %v5549_v25 = vpop.f32.mrf.mxu1 }
 0x2f9   : > { %v5551_v13 = vpop.f32.mrf.mxu0  ;;  %v5553_v0 = vpop.f32.mrf.mxu1 }
 0x2fa   : > { %5978 = vst [vmem:[#allocation14_spill] sm:$0xff] %v5553_v0 }
 0x2fb   : > { %v5555_v38 = vpop.f32.mrf.mxu0  ;;  %v5557_v11 = vpop.f32.mrf.mxu1 }
 0x2fc   : > { %5979 = vst [vmem:[#allocation16_spill] sm:$0xff] %v5557_v11 }
 0x2fd   : > { %v5559_v40 = vpop.f32.mrf.mxu0  ;;  %v5561_v29 = vpop.f32.mrf.mxu1 }
 0x2fe   : > { %5980 = vst [vmem:[#allocation15_spill] sm:$0xff] %v5561_v29 }
 0x2ff   : > { %v5563_v12 = vpop.f32.mrf.mxu0  ;;  %v5565_v16 = vpop.f32.mrf.mxu1 }
 0x300   : > { %5981 = vst [vmem:[#allocation18_spill] sm:$0xff] %v5565_v16 }
 0x301   : > { %v5567_v22 = vpop.f32.mrf.mxu0  ;;  %v5569_v59 = vpop.f32.mrf.mxu1 }
 0x302   : > { %5982 = vst [vmem:[#allocation17_spill] sm:$0xff] %v5569_v59 }
 0x303   : > { %v5571_v62 = vpop.f32.mrf.mxu0  ;;  %v5573_v36 = vpop.f32.mrf.mxu1 }
 0x304   : > { %5983 = vst [vmem:[#allocation19_spill] sm:$0xff] %v5573_v36 }
 0x305   : > { %v5575_v3 = vpop.f32.mrf.mxu0  ;;  %v5577_v49 = vpop.f32.mrf.mxu1 }
 0x306   : > { %5984 = vst [vmem:[#allocation20_spill] sm:$0xff] %v5575_v3  ;;  %5985 = vst [vmem:[#allocation21_spill] sm:$0xff] %v5577_v49 }
 0x307   : > { %v5579_v28 = vpop.f32.mrf.mxu0  ;;  %v5581_v57 = vpop.f32.mrf.mxu1 }
 0x308   : > { %5986 = vst [vmem:[#allocation22_spill] sm:$0xff] %v5579_v28  ;;  %5987 = vst [vmem:[#allocation23_spill] sm:$0xff] %v5581_v57 }
 0x309   : > { %v5583_v18 = vpop.f32.mrf.mxu0  ;;  %v5585_v21 = vpop.f32.mrf.mxu1 }
 0x30a   : > { %5988 = vst [vmem:[#allocation26_spill] sm:$0xff] %v5583_v18  ;;  %5989 = vst [vmem:[#allocation30_spill] sm:$0xff] %v5585_v21  ;;  %v6004_v18 = vld [vmem:[#allocation25_spill] sm:$0xff] }
 0x30b   : > { %v5587_v34 = vpop.f32.mrf.mxu0  ;;  %v5589_v14 = vpop.f32.mrf.mxu1 }
 0x30c   : > { %5990 = vst [vmem:[#allocation29_spill] sm:$0xff] %v5587_v34  ;;  %5991 = vst [vmem:[#allocation34_spill] sm:$0xff] %v5589_v14 }
 0x30d   : > { %v5591_v8 = vpop.f32.mrf.mxu0  ;;  %v5593_v59 = vpop.f32.mrf.mxu1 }
 0x30e   : > { %5992 = vst [vmem:[#allocation33_spill] sm:$0xff] %v5591_v8  ;;  %5993 = vst [vmem:[#allocation40_spill] sm:$0xff] %v5593_v59  ;;  %v6002_v59 = vld [vmem:[#allocation24_spill] sm:$0xff] }
 0x30f   : > { %v5595_v36 = vpop.f32.mrf.mxu0  ;;  %v5597_v43 = vpop.f32.mrf.mxu1  ;;  %v1964_v29 = vadd.f32 %v3665_v20, %v6002_v59 }
 0x310   : > { %5994 = vst [vmem:[#allocation39_spill] sm:$0xff] %v5595_v36  ;;  %5995 = vst [vmem:[#allocation42_spill] sm:$0xff] %v5597_v43 }
 0x311   : > { %v5599_v49 = vpop.f32.mrf.mxu0  ;;  %v5601_v16 = vpop.f32.mrf.mxu1 }
 0x312   : > { %5996 = vst [vmem:[#allocation41_spill] sm:$0xff] %v5599_v49  ;;  %5997 = vst [vmem:[#allocation47_spill] sm:$0xff] %v5601_v16  ;;  %v1957_v49 = vadd.f32 %v1956_v41, %v6004_v18  ;;  %v6008_v41 = vld [vmem:[#allocation31_spill] sm:$0xff] }
 0x313   : > { %v5603_v57 = vpop.f32.mrf.mxu0  ;;  %v5605_v53 = vpop.f32.mrf.mxu1 }
 0x314   : > { %5998 = vst [vmem:[#allocation48_spill] sm:$0xff] %v5603_v57  ;;  %5999 = vst [vmem:[#allocation49_spill] sm:$0xff] %v5605_v53  ;;  %v6006_v57 = vld [vmem:[#allocation27_spill] sm:$0xff]  ;;  %v2263_v53 = vadd.f32 %v5489_v27, %v1964_v29  ;;  %v2255_v20 = vadd.f32 %v5491_v60, %v1957_v49  ;;  %v1992_v27 = vadd.f32 %v5511_v55, %v6008_v41  ;;  %v6009_v60 = vld [vmem:[#allocation32_spill] sm:$0xff] }
 0x315   : > { %v5607_v21 = vpop.f32.mrf.mxu0  ;;  %v3857_v34 = vpop.f32.mrf.mxu1  ;;  %v1978_v11 = vadd.f32 %v3668_v56, %v6006_v57 }
 0x316   : > { %6000 = vst [vmem:[#allocation50_spill] sm:$0xff] %v5607_v21 }
 0x317   : > { %v5609_v14 = vpop.f32.mrf.mxu0  ;;  %v2862_v8 = vpop.f32.mrf.mxu1 }
 0x318   : > { %6001 = vst [vmem:[#allocation51_spill] sm:$0xff] %v5609_v14  ;;  %v1971_v14 = vadd.f32 %v5507_v45, %v6007_v1  ;;  %v2279_v1 = vadd.f32 %v5493_v63, %v1978_v11  ;;  %v1985_v45 = vadd.f32 %v5515_v48, %v6009_v60 }
 0x319   : > { %v5612_v36 = vpop.f32.mrf.mxu0  ;;  %v3860_v43 = vpop.f32.mrf.mxu1 }
 0x31a   : > { %6003 = vst [vmem:[#allocation24_spill] sm:$0xff] %v5612_v36 }
 0x31b   : > { %v5615_v17 = vpop.f32.mrf.mxu0  ;;  %v2874_v16 = vpop.f32.mrf.mxu1 }
 0x31c   : > { %6005 = vst [vmem:[#allocation25_spill] sm:$0xff] %v5615_v17  ;;  %v2271_v17 = vadd.f32 %v5497_v61, %v1971_v14  ;;  %v2287_v61 = vadd.f32 %v5503_v47, %v1985_v45  ;;  %v6014_v45 = vld [vmem:[#allocation43_spill] sm:$0xff] }
 0x31d   : > { %v3793_v21 = vpop.f32.mrf.mxu0  ;;  %v3863_v28 = vpop.f32.mrf.mxu1 }
 0x31e   : > { %v2604_v0 = vadd.f32 %v3793_v21, %v2263_v53 }
 0x31f   : > { %v2597_v18 = vpop.f32.mrf.mxu0  ;;  %v2886_v57 = vpop.f32.mrf.mxu1 }
 0x320   : > { %v2869_v56 = vadd.f32 %v3857_v34, %v2604_v0  ;;  %v2598_v29 = vadd.f32 %v2597_v18, %v2255_v20  ;;  %v2006_v34 = vadd.f32 %v5519_v30, %v6010_v7  ;;  %v2295_v0 = vadd.f32 %v5501_v19, %v1992_v27  ;;  %v6011_v18 = vld [vmem:[#allocation36_spill] sm:$0xff]  ;;  %v6013_v27 = vld [vmem:[#allocation38_spill] sm:$0xff] }
 0x321   : > { %v3796_v53 = vpop.f32.mrf.mxu0  ;;  %v3866_v21 = vpop.f32.mrf.mxu1 }
 0x322   : > { %3053 = vst [vmem:[%s5627_s6 + $0x8] sm:$0xff] %v2869_v56  ;;  %v2863_v59 = vadd.f32 %v2862_v8, %v2598_v29  ;;  %v2616_v49 = vadd.f32 %v3796_v53, %v2279_v1  ;;  %v1999_v8 = vadd.f32 %v5523_v23, %v6011_v18  ;;  %v6012_v29 = vld [vmem:[#allocation37_spill] sm:$0xff]  ;;  %v2311_v19 = vadd.f32 %v5505_v5, %v2006_v34 }
 0x323   : > { %v2609_v36 = vpop.f32.mrf.mxu0  ;;  %v2898_v3 = vpop.f32.mrf.mxu1  ;;  %v2020_v7 = vadd.f32 %v5527_v58, %v6012_v29  ;;  %v2013_v23 = vadd.f32 %v5531_v39, %v6013_v27  ;;  %v6016_v18 = vld [vmem:[#allocation45_spill] sm:$0xff] }
 0x324   : > { %3052 = vst [vmem:[%s5627_s6] sm:$0xff] %v2863_v59  ;;  %v2881_v55 = vadd.f32 %v3860_v43, %v2616_v49  ;;  %v2610_v63 = vadd.f32 %v2609_v36, %v2271_v17  ;;  %v2303_v1 = vadd.f32 %v5509_v52, %v1999_v8 }
 0x325   : > { %v3799_v11 = vpop.f32.mrf.mxu0  ;;  %v3869_v20 = vpop.f32.mrf.mxu1  ;;  %v2327_v59 = vadd.f32 %v5513_v31, %v2020_v7 }
 0x326   : > { %3055 = vst [vmem:[%s5627_s6 + $0x18] sm:$0xff] %v2881_v55  ;;  %v2875_v48 = vadd.f32 %v2874_v16, %v2610_v63  ;;  %v2628_v14 = vadd.f32 %v3799_v11, %v2295_v0  ;;  %v6015_v55 = vld [vmem:[#allocation44_spill] sm:$0xff]  ;;  %v2319_v63 = vadd.f32 %v5517_v2, %v2013_v23 }
 0x327   : > { %v2621_v41 = vpop.f32.mrf.mxu0  ;;  %v2910_v56 = vpop.f32.mrf.mxu1  ;;  %v2027_v39 = vadd.f32 %v5539_v4, %v6015_v55 }
 0x328   : > { %3054 = vst [vmem:[%s5627_s6 + $0x10] sm:$0xff] %v2875_v48  ;;  %v2893_v17 = vadd.f32 %v3863_v28, %v2628_v14  ;;  %v2622_v43 = vadd.f32 %v2621_v41, %v2287_v61  ;;  %v2034_v28 = vadd.f32 %v5535_v42, %v6014_v45  ;;  %v2048_v42 = vadd.f32 %v5543_v51, %v6016_v18  ;;  %v6017_v61 = vld [vmem:[#allocation46_spill] sm:$0xff]  ;;  %v6023_v18 = vld [vmem:[#allocation16_spill] sm:$0xff] }
 0x329   : > { %v3802_v30 = vpop.f32.mrf.mxu0  ;;  %v3872_v36 = vpop.f32.mrf.mxu1  ;;  %v2041_v4 = vadd.f32 %v5547_v37, %v6017_v61  ;;  %v2335_v41 = vadd.f32 %v5525_v33, %v2027_v39  ;;  %v2062_v51 = vadd.f32 %v5551_v13, %v5248_v35  ;;  %v2055_v37 = vadd.f32 %v5555_v38, %v5255_v46  ;;  %v6020_v39 = vld [vmem:[#allocation14_spill] sm:$0xff] }
 0x32a   : > { %3057 = vst [vmem:[%s5627_s6 + $0x28] sm:$0xff] %v2893_v17  ;;  %v2887_v16 = vadd.f32 %v2886_v57, %v2622_v43  ;;  %v2640_v47 = vadd.f32 %v3802_v30, %v2311_v19  ;;  %v2343_v8 = vadd.f32 %v5521_v32, %v2034_v28  ;;  %v2359_v17 = vadd.f32 %v5529_v54, %v2048_v42 }
 0x32b   : > { %v2633_v53 = vpop.f32.mrf.mxu0  ;;  %v2922_v60 = vpop.f32.mrf.mxu1  ;;  %v2351_v30 = vadd.f32 %v5533_v15, %v2041_v4  ;;  %v2076_v35 = vadd.f32 %v5559_v40, %v5307_v24  ;;  %v2069_v46 = vadd.f32 %v5563_v12, %v5315_v26  ;;  %v2090_v24 = vadd.f32 %v5567_v22, %v5367_v10  ;;  %v6019_v10 = vld [vmem:[#allocation20_spill] sm:$0xff] }
 0x32c   : > { %3056 = vst [vmem:[%s5627_s6 + $0x20] sm:$0xff] %v2887_v16  ;;  %v2905_v58 = vadd.f32 %v3866_v21, %v2640_v47  ;;  %v2634_v5 = vadd.f32 %v2633_v53, %v2303_v1  ;;  %v2367_v1 = vadd.f32 %v5541_v44, %v2055_v37  ;;  %v2083_v26 = vadd.f32 %v5571_v62, %v5372_v50  ;;  %v6022_v50 = vld [vmem:[#allocation22_spill] sm:$0xff] }
 0x32d   : > { %v3805_v49 = vpop.f32.mrf.mxu0  ;;  %v3875_v34 = vpop.f32.mrf.mxu1  ;;  %v2391_v45 = vadd.f32 %v5545_v9, %v2076_v35 }
 0x32e   : > { %3059 = vst [vmem:[%s5627_s6 + $0x38] sm:$0xff] %v2905_v58  ;;  %v2899_v57 = vadd.f32 %v2898_v3, %v2634_v5  ;;  %v2652_v52 = vadd.f32 %v3805_v49, %v2327_v59  ;;  %v2383_v5 = vadd.f32 %v5549_v25, %v2069_v46  ;;  %v2399_v42 = vadd.f32 %v6023_v18, %v2083_v26  ;;  %v6034_v46 = vld [vmem:[#allocation39_spill] sm:$0xff]  ;;  %v6038_v26 = vld [vmem:[#allocation21_spill] sm:$0xff] }
 0x32f   : > { %v2645_v0 = vpop.f32.mrf.mxu0  ;;  %v2934_v11 = vpop.f32.mrf.mxu1 }
 0x330   : > { %3058 = vst [vmem:[%s5627_s6 + $0x30] sm:$0xff] %v2899_v57  ;;  %v2917_v21 = vadd.f32 %v3869_v20, %v2652_v52  ;;  %v2646_v31 = vadd.f32 %v2645_v0, %v2319_v63  ;;  %v2407_v57 = vadd.f32 %v6020_v39, %v2090_v24  ;;  %v6021_v0 = vld [vmem:[#allocation3_spill] sm:$0xff] }
 0x331   : > { %v3808_v48 = vpop.f32.mrf.mxu0  ;;  %v3878_v14 = vpop.f32.mrf.mxu1  ;;  %v2097_v62 = vadd.f32 %v6022_v50, %v6021_v0 }
 0x332   : > { %3061 = vst [vmem:[%s5627_s6 + $0x48] sm:$0xff] %v2917_v21  ;;  %v2911_v3 = vadd.f32 %v2910_v56, %v2646_v31  ;;  %v2664_v2 = vadd.f32 %v3808_v48, %v2343_v8  ;;  %v6024_v8 = vld [vmem:[#allocation5_spill] sm:$0xff]  ;;  %v6025_v48 = vld [vmem:[#allocation26_spill] sm:$0xff] }
 0x333   : > { %v2657_v29 = vpop.f32.mrf.mxu0  ;;  %v2946_v7 = vpop.f32.mrf.mxu1 }
 0x334   : > { %3060 = vst [vmem:[%s5627_s6 + $0x40] sm:$0xff] %v2911_v3  ;;  %v2929_v20 = vadd.f32 %v3872_v36, %v2664_v2  ;;  %v2658_v32 = vadd.f32 %v2657_v29, %v2335_v41  ;;  %v2375_v36 = vadd.f32 %v5537_v6, %v2062_v51  ;;  %v6026_v3 = vld [vmem:[#allocation15_spill] sm:$0xff]  ;;  %v6028_v51 = vld [vmem:[#allocation29_spill] sm:$0xff] }
 0x335   : > { %v3811_v43 = vpop.f32.mrf.mxu0  ;;  %v3881_v19 = vpop.f32.mrf.mxu1 }
 0x336   : > { %3063 = vst [vmem:[%s5627_s6 + $0x58] sm:$0xff] %v2929_v20  ;;  %v2923_v56 = vadd.f32 %v2922_v60, %v2658_v32  ;;  %v2676_v33 = vadd.f32 %v3811_v43, %v2359_v17  ;;  %v6029_v43 = vld [vmem:[#allocation18_spill] sm:$0xff] }
 0x337   : > { %v2669_v27 = vpop.f32.mrf.mxu0  ;;  %v2958_v23 = vpop.f32.mrf.mxu1 }
 0x338   : > { %3062 = vst [vmem:[%s5627_s6 + $0x50] sm:$0xff] %v2923_v56  ;;  %v2941_v13 = vadd.f32 %v3875_v34, %v2676_v33  ;;  %v2670_v54 = vadd.f32 %v2669_v27, %v2351_v30  ;;  %v6018_v34 = vld [vmem:[#allocation2_spill] sm:$0xff]  ;;  %v6031_v30 = vld [vmem:[#allocation33_spill] sm:$0xff] }
 0x339   : > { %v3814_v16 = vpop.f32.mrf.mxu0  ;;  %v3884_v47 = vpop.f32.mrf.mxu1  ;;  %v2104_v22 = vadd.f32 %v6019_v10, %v6018_v34  ;;  %v6030_v33 = vld [vmem:[#allocation6_spill] sm:$0xff]  ;;  %v6040_v34 = vld [vmem:[#allocation48_spill] sm:$0xff] }
 0x33a   : > { %3065 = vst [vmem:[%s5627_s6 + $0x68] sm:$0xff] %v2941_v13  ;;  %v2935_v38 = vadd.f32 %v2934_v11, %v2670_v54  ;;  %v2688_v15 = vadd.f32 %v3814_v16, %v2375_v36  ;;  %v2132_v27 = vadd.f32 %v6031_v30, %v6030_v33  ;;  %v6032_v13 = vld [vmem:[#allocation17_spill] sm:$0xff]  ;;  %v6053_v30 = vld [vmem:[#allocation42_spill] sm:$0xff] }
 0x33b   : > { %v2681_v53 = vpop.f32.mrf.mxu0  ;;  %v2970_v60 = vpop.f32.mrf.mxu1  ;;  %v2423_v2 = vadd.f32 %v6026_v3, %v2104_v22  ;;  %v6048_v3 = vld [vmem:[#allocation12_spill] sm:$0xff] }
 0x33c   : > { %3064 = vst [vmem:[%s5627_s6 + $0x60] sm:$0xff] %v2935_v38  ;;  %v2953_v40 = vadd.f32 %v3878_v14, %v2688_v15  ;;  %v2682_v6 = vadd.f32 %v2681_v53, %v2367_v1  ;;  %v2118_v14 = vadd.f32 %v6025_v48, %v6024_v8  ;;  %v6035_v53 = vld [vmem:[#allocation19_spill] sm:$0xff] }
 0x33d   : > { %v3817_v28 = vpop.f32.mrf.mxu0  ;;  %v3887_v58 = vpop.f32.mrf.mxu1 }
 0x33e   : > { %3067 = vst [vmem:[%s5627_s6 + $0x78] sm:$0xff] %v2953_v40  ;;  %v2947_v12 = vadd.f32 %v2946_v7, %v2682_v6  ;;  %v2700_v44 = vadd.f32 %v3817_v28, %v2391_v45  ;;  %v6027_v7 = vld [vmem:[#allocation4_spill] sm:$0xff]  ;;  %v2439_v54 = vadd.f32 %v6032_v13, %v2118_v14  ;;  %v6037_v6 = vld [vmem:[#allocation41_spill] sm:$0xff]  ;;  %v6047_v14 = vld [vmem:[#allocation34_spill] sm:$0xff] }
 0x33f   : > { %v2693_v59 = vpop.f32.mrf.mxu0  ;;  %v2982_v49 = vpop.f32.mrf.mxu1  ;;  %v2111_v20 = vadd.f32 %v6028_v51, %v6027_v7  ;;  %v6036_v40 = vld [vmem:[#allocation8_spill] sm:$0xff] }
 0x340   : > { %3066 = vst [vmem:[%s5627_s6 + $0x70] sm:$0xff] %v2947_v12  ;;  %v2965_v55 = vadd.f32 %v3881_v19, %v2700_v44  ;;  %v2694_v9 = vadd.f32 %v2693_v59, %v2383_v5  ;;  %v2415_v19 = vadd.f32 %v6029_v43, %v2097_v62  ;;  %v2146_v45 = vadd.f32 %v6037_v6, %v6036_v40  ;;  %v6039_v59 = vld [vmem:[#allocation9_spill] sm:$0xff]  ;;  %v6044_v62 = vld [vmem:[#allocation30_spill] sm:$0xff]  ;;  %v6050_v51 = vld [vmem:[#allocation40_spill] sm:$0xff] }
 0x341   : > { %v3820_v52 = vpop.f32.mrf.mxu0  ;;  %v3890_v63 = vpop.f32.mrf.mxu1  ;;  %v2455_v12 = vadd.f32 %v6038_v26, %v2132_v27  ;;  %v2139_v10 = vadd.f32 %v6040_v34, %v6039_v59  ;;  %v6051_v43 = vld [vmem:[#allocation13_spill] sm:$0xff] }
 0x342   : > { %3069 = vst [vmem:[%s5627_s6 + $0x88] sm:$0xff] %v2965_v55  ;;  %v2959_v11 = vadd.f32 %v2958_v23, %v2694_v9  ;;  %v2712_v25 = vadd.f32 %v3820_v52, %v2407_v57  ;;  %v6041_v55 = vld [vmem:[#allocation23_spill] sm:$0xff]  ;;  %v6042_v57 = vld [vmem:[#allocation10_spill] sm:$0xff] }
 0x343   : > { %v2705_v21 = vpop.f32.mrf.mxu0  ;;  %v2994_v31 = vpop.f32.mrf.mxu1  ;;  %v6043_v52 = vld [vmem:[#allocation50_spill] sm:$0xff] }
 0x344   : > { %3068 = vst [vmem:[%s5627_s6 + $0x80] sm:$0xff] %v2959_v11  ;;  %v2977_v61 = vadd.f32 %v3884_v47, %v2712_v25  ;;  %v2706_v4 = vadd.f32 %v2705_v21, %v2399_v42  ;;  %v6033_v47 = vld [vmem:[#allocation7_spill] sm:$0xff]  ;;  %v2160_v0 = vadd.f32 %v6043_v52, %v6042_v57  ;;  %v2471_v11 = vadd.f32 %v6044_v62, %v2146_v45 }
 0x345   : > { %v3823_v41 = vpop.f32.mrf.mxu0  ;;  %v3893_v29 = vpop.f32.mrf.mxu1  ;;  %v2125_v38 = vadd.f32 %v6034_v46, %v6033_v47  ;;  %v6045_v42 = vld [vmem:[#allocation11_spill] sm:$0xff] }
 0x346   : > { %3071 = vst [vmem:[%s5627_s6 + $0x98] sm:$0xff] %v2977_v61  ;;  %v2971_v32 = vadd.f32 %v2970_v60, %v2706_v4  ;;  %v2724_v17 = vadd.f32 %v3823_v41, %v2423_v2  ;;  %v2431_v60 = vadd.f32 %v6035_v53, %v2111_v20  ;;  %v6046_v21 = vld [vmem:[#allocation51_spill] sm:$0xff]  ;;  %v2463_v61 = vadd.f32 %v6047_v14, %v2139_v10  ;;  %v6049_v2 = vld [vmem:[#allocation24_spill] sm:$0xff] }
 0x347   : > { %v2717_v37 = vpop.f32.mrf.mxu0  ;;  %v3006_v56 = vpop.f32.mrf.mxu1  ;;  %v2447_v9 = vadd.f32 %v6041_v55, %v2125_v38  ;;  %v2153_v8 = vadd.f32 %v6046_v21, %v6045_v42  ;;  %v2174_v41 = vadd.f32 %v6049_v2, %v6048_v3  ;;  %v2487_v20 = vadd.f32 %v6050_v51, %v2160_v0 }
 0x348   : > { %3070 = vst [vmem:[%s5627_s6 + $0x90] sm:$0xff] %v2971_v32  ;;  %v2989_v23 = vadd.f32 %v3887_v58, %v2724_v17  ;;  %v2718_v35 = vadd.f32 %v2717_v37, %v2415_v19  ;;  %v6052_v19 = vld [vmem:[#allocation25_spill] sm:$0xff] }
 0x349   : > { %v3826_v36 = vpop.f32.mrf.mxu0  ;;  %v3896_v16 = vpop.f32.mrf.mxu1  ;;  %v2167_v37 = vadd.f32 %v6052_v19, %v6051_v43  ;;  %v2479_v27 = vadd.f32 %v6053_v30, %v2153_v8 }
 0x34a   : > { %3073 = vst [vmem:[%s5627_s6 + $0xa8] sm:$0xff] %v2989_v23  ;;  %v2983_v15 = vadd.f32 %v2982_v49, %v2718_v35  ;;  %v2736_v1 = vadd.f32 %v3826_v36, %v2439_v54  ;;  %v6054_v54 = vld [vmem:[#allocation47_spill] sm:$0xff] }
 0x34b   : > { %v2729_v24 = vpop.f32.mrf.mxu0  ;;  %v3018_v44 = vpop.f32.mrf.mxu1  ;;  %v2503_v36 = vadd.f32 %v6054_v54, %v2174_v41 }
 0x34c   : > { %3072 = vst [vmem:[%s5627_s6 + $0xa0] sm:$0xff] %v2983_v15  ;;  %v3001_v28 = vadd.f32 %v3890_v63, %v2736_v1  ;;  %v2730_v58 = vadd.f32 %v2729_v24, %v2431_v60  ;;  %v6055_v15 = vld [vmem:[#allocation49_spill] sm:$0xff] }
 0x34d   : > { %v3829_v5 = vpop.f32.mrf.mxu0  ;;  %v3899_v25 = vpop.f32.mrf.mxu1  ;;  %v2495_v1 = vadd.f32 %v6055_v15, %v2167_v37 }
 0x34e   : > { %3075 = vst [vmem:[%s5627_s6 + $0xb8] sm:$0xff] %v3001_v28  ;;  %v2995_v49 = vadd.f32 %v2994_v31, %v2730_v58  ;;  %v2748_v22 = vadd.f32 %v3829_v5, %v2455_v12 }
 0x34f   : > { %v2741_v39 = vpop.f32.mrf.mxu0  ;;  %v3030_v32 = vpop.f32.mrf.mxu1 }
 0x350   : > { %3074 = vst [vmem:[%s5627_s6 + $0xb0] sm:$0xff] %v2995_v49  ;;  %v3013_v63 = vadd.f32 %v3893_v29, %v2748_v22  ;;  %v2742_v50 = vadd.f32 %v2741_v39, %v2447_v9 }
 0x351   : > { %v3832_v18 = vpop.f32.mrf.mxu0 }
 0x352   : > { %3077 = vst [vmem:[%s5627_s6 + $0xc8] sm:$0xff] %v3013_v63  ;;  %v3007_v31 = vadd.f32 %v3006_v56, %v2742_v50  ;;  %v2760_v48 = vadd.f32 %v3832_v18, %v2471_v11 }
 0x353   : > { %v2753_v4 = vpop.f32.mrf.mxu0 }
 0x354   : > { %3076 = vst [vmem:[%s5627_s6 + $0xc0] sm:$0xff] %v3007_v31  ;;  %v3025_v29 = vadd.f32 %v3896_v16, %v2760_v48  ;;  %v2754_v7 = vadd.f32 %v2753_v4, %v2463_v61  ;;  %v3902_v16 = vpop.f32.mrf.mxu1 }
 0x355   : > { %v3835_v17 = vpop.f32.mrf.mxu0 }
 0x356   : > { %3079 = vst [vmem:[%s5627_s6 + $0xd8] sm:$0xff] %v3025_v29  ;;  %v3019_v56 = vadd.f32 %v3018_v44, %v2754_v7  ;;  %v2772_v33 = vadd.f32 %v3835_v17, %v2487_v20  ;;  %v3042_v40 = vpop.f32.mrf.mxu1 }
 0x357   : > { %v2765_v23 = vpop.f32.mrf.mxu0 }
 0x358   : > { %3078 = vst [vmem:[%s5627_s6 + $0xd0] sm:$0xff] %v3019_v56  ;;  %v3037_v35 = vadd.f32 %v3899_v25, %v2772_v33  ;;  %v2766_v13 = vadd.f32 %v2765_v23, %v2479_v27 }
 0x359   : > { %v3838_v47 = vpop.f32.mrf.mxu0 }
 0x35a   : > { %3081 = vst [vmem:[%s5627_s6 + $0xe8] sm:$0xff] %v3037_v35  ;;  %v3031_v46 = vadd.f32 %v3030_v32, %v2766_v13  ;;  %v2784_v38 = vadd.f32 %v3838_v47, %v2503_v36 }
 0x35b   : > { %v2777_v53 = vpop.f32.mrf.mxu0 }
 0x35c   : > { %3080 = vst [vmem:[%s5627_s6 + $0xe0] sm:$0xff] %v3031_v46  ;;  %v3049_v60 = vadd.f32 %v3902_v16, %v2784_v38  ;;  %v2778_v24 = vadd.f32 %v2777_v53, %v2495_v1 }
 0x35e   : > { %3083 = vst [vmem:[%s5627_s6 + $0xf8] sm:$0xff] %v3049_v60  ;;  %v3043_v6 = vadd.f32 %v3042_v40, %v2778_v24 }
 0x360   : > { %3082 = vst [vmem:[%s5627_s6 + $0xf0] sm:$0xff] %v3043_v6 }
 0x361 PF: > { %s12_s9 = sadd.s32 1, %s4000_s9  }
 0x362   : > { %p9_p4 = scmp.ge.s32.totalorder %s12_s9, 5  }
 0x364   :  { %11 = sbr.rel (!%p9_p4) target bundleno = 1 (0x1), region = 58 }

</bundles_post_ra>
